<compile_context>
chip_gen: v7x
topology: tpu7x:2x2x1
jax: 0.10.0
libtpu: 0.0.40
codegen_flags: <defaults>
</compile_context>

<pallas_src>
import jax
import jax.numpy as jnp
from jax import lax
from jax.experimental import pallas as pl
from jax.experimental.pallas import tpu as pltpu


def _bitonic_sort_lanes(x):
    """Ascending bitonic sort of each row of x (R, N) along the lane axis.

    N must be a power of two.  Partner gather x[i ^ j] is implemented with two
    static XLU rotations selected per element -- no permutation matmul.
    """
    R, N = x.shape
    col = lax.broadcasted_iota(jnp.int32, (R, N), 1)

    k = 2
    while k <= N:
        j = k // 2
        while j >= 1:
            is_lower = (col & j) == 0          # low end of the compare pair
            # partner[i] = x[i ^ j]:
            #   bit j clear: i^j = i + j  -> roll by N - j (i.e. shift -j)
            #   bit j set  : i^j = i - j  -> roll by +j
            partner = jnp.where(is_lower,
                                pltpu.roll(x, N - j, axis=1),
                                pltpu.roll(x, j, axis=1))
            ascending = (col & k) == 0
            keep_min = is_lower == ascending
            x = jnp.where(keep_min,
                          jnp.minimum(x, partner),
                          jnp.maximum(x, partner))
            j //= 2
        k *= 2
    return x


def _make_kernel(F, F_pad, N_valid):
    inv_count = 1.0 / float(N_valid * F)

    def kernel(data_ref, out_ref):
        # Fused slab: rows [0, F_pad) = pred features, [F_pad, 2*F_pad) = label
        # features; one bitonic network sorts every row along the lane axis.
        d = _bitonic_sort_lanes(data_ref[...])

        p_s = d[0:F, :]
        l_s = d[F_pad:F_pad + F, :]

        diff = jnp.abs(p_s - l_s)
        rel = diff * pl.reciprocal(jnp.abs(l_s), approx=False)   # EUP divide

        if N_valid != d.shape[1]:
            # +inf pad columns sorted to the end -> exclude them from the mean.
            colm = lax.broadcasted_iota(jnp.int32, rel.shape, 1)
            rel = jnp.where(colm < N_valid, rel, 0.0)

        s = jnp.sum(rel, axis=1, keepdims=True)   # (F, 1)
        s = jnp.sum(s, axis=0, keepdims=True)     # (1, 1)
        out_ref[...] = s * inv_count

    return kernel


def rel_mae_cost(pred_y, label_y):
    """JAX wrapper reproducing rel_mae_cost.forward; returns a scalar."""
    assert pred_y.shape == label_y.shape and pred_y.ndim == 2
    N, F = pred_y.shape

    # Lane-dense fused layout: (2*F_pad, N_pad), sort axis last.
    N_pad = max(128, pl.next_power_of_2(N))        # power of two, >= 128 lanes
    F_pad = ((F + 7) // 8) * 8                     # multiple of 8 sublanes

    def to_slab(x):
        x = jnp.transpose(x.astype(jnp.float32))                       # (F, N)
        x = jnp.pad(x, ((0, 0), (0, N_pad - N)), constant_values=jnp.inf)
        if F_pad != F:
            x = jnp.pad(x, ((0, F_pad - F), (0, 0)), constant_values=1.0)
        return x

    data = jnp.concatenate([to_slab(pred_y), to_slab(label_y)], axis=0)

    # Explicit VMEM budget (keeps larger N safe on v5e's 16 MiB scoped default,
    # capped well under v7x's 64 MiB physical VMEM).
    vmem_limit = int(min(max(6 * data.size * 4, 16 * 1024 * 1024),
                         64 * 1024 * 1024))

    out = pl.pallas_call(
        _make_kernel(F, F_pad, N),
        out_shape=jax.ShapeDtypeStruct((1, 1), jnp.float32),
        in_specs=[pl.BlockSpec((2 * F_pad, N_pad), lambda: (0, 0))],
        out_specs=pl.BlockSpec((1, 1), lambda: (0, 0)),
        compiler_params=pltpu.CompilerParams(vmem_limit_bytes=vmem_limit),
    )(data)
    return out[0, 0]


if __name__ == "__main__":
    key = jax.random.PRNGKey(0)
    k1, k2 = jax.random.split(key)

    # Small shapes consistent with the module: N samples x F predicted values.
    N, F = 16, 8
    # keep labels away from zero so the relative error is well defined
    pred_y = jax.random.uniform(k1, (N, F), jnp.float32, minval=0.5, maxval=1.5)
    label_y = jax.random.uniform(k2, (N, F), jnp.float32, minval=0.5, maxval=1.5)

    out = jax.block_until_ready(rel_mae_cost(pred_y, label_y))

    # pure-JAX reference (same semantics as the PyTorch forward)
    ps = jnp.sort(pred_y, axis=0)
    ls = jnp.sort(label_y, axis=0)
    ref = jnp.mean(jnp.abs((ps - ls) / ls))

    assert abs(float(out) - float(ref)) < 1e-5, (float(out), float(ref))
    print("KERNEL_OK")
</pallas_src>

<mosaic_0001>
module attributes {stable_mosaic.version = 11 : i64} {
  func.func @kernel(%arg0: memref<16x128xf32, #tpu.memory_space<vmem>>, %arg1: memref<1x1xf32, #tpu.memory_space<vmem>>) attributes {dimension_semantics = [], scalar_prefetch = 0 : i64, scratch_operands = 0 : i64, tpu.core_type = #tpu.core_type<tc>} {
    %c0 = arith.constant 0 : index
    %c0_0 = arith.constant 0 : index
    %0 = vector.load %arg0[%c0, %c0_0] : memref<16x128xf32, #tpu.memory_space<vmem>>, vector<16x128xf32>
    %1 = tpu.iota {dimensions = array<i32: 1>} : vector<16x128xi32>
    %c1_i32 = arith.constant 1 : i32
    %2 = vector.broadcast %c1_i32 : i32 to vector<16x128xi32>
    %3 = arith.andi %1, %2 : vector<16x128xi32>
    %c0_i32 = arith.constant 0 : i32
    %4 = vector.broadcast %c0_i32 : i32 to vector<16x128xi32>
    %5 = arith.cmpi eq, %3, %4 : vector<16x128xi32>
    %c127_i32 = arith.constant 127 : i32
    %6 = tpu.dynamic_rotate %0 by %c127_i32 dim 1 : vector<16x128xf32>, i32 -> vector<16x128xf32>
    %c1_i32_1 = arith.constant 1 : i32
    %7 = tpu.dynamic_rotate %0 by %c1_i32_1 dim 1 : vector<16x128xf32>, i32 -> vector<16x128xf32>
    %8 = arith.select %5, %6, %7 : vector<16x128xi1>, vector<16x128xf32>
    %c2_i32 = arith.constant 2 : i32
    %9 = vector.broadcast %c2_i32 : i32 to vector<16x128xi32>
    %10 = arith.andi %1, %9 : vector<16x128xi32>
    %c0_i32_2 = arith.constant 0 : i32
    %11 = vector.broadcast %c0_i32_2 : i32 to vector<16x128xi32>
    %12 = arith.cmpi eq, %10, %11 : vector<16x128xi32>
    %13 = arith.xori %5, %12 : vector<16x128xi1>
    %cst = arith.constant dense<true> : vector<16x128xi1>
    %14 = arith.xori %13, %cst : vector<16x128xi1>
    %15 = arith.minimumf %0, %8 : vector<16x128xf32>
    %16 = arith.maximumf %0, %8 : vector<16x128xf32>
    %17 = arith.select %14, %15, %16 : vector<16x128xi1>, vector<16x128xf32>
    %c2_i32_3 = arith.constant 2 : i32
    %18 = vector.broadcast %c2_i32_3 : i32 to vector<16x128xi32>
    %19 = arith.andi %1, %18 : vector<16x128xi32>
    %c0_i32_4 = arith.constant 0 : i32
    %20 = vector.broadcast %c0_i32_4 : i32 to vector<16x128xi32>
    %21 = arith.cmpi eq, %19, %20 : vector<16x128xi32>
    %c126_i32 = arith.constant 126 : i32
    %22 = tpu.dynamic_rotate %17 by %c126_i32 dim 1 : vector<16x128xf32>, i32 -> vector<16x128xf32>
    %c2_i32_5 = arith.constant 2 : i32
    %23 = tpu.dynamic_rotate %17 by %c2_i32_5 dim 1 : vector<16x128xf32>, i32 -> vector<16x128xf32>
    %24 = arith.select %21, %22, %23 : vector<16x128xi1>, vector<16x128xf32>
    %c4_i32 = arith.constant 4 : i32
    %25 = vector.broadcast %c4_i32 : i32 to vector<16x128xi32>
    %26 = arith.andi %1, %25 : vector<16x128xi32>
    %c0_i32_6 = arith.constant 0 : i32
    %27 = vector.broadcast %c0_i32_6 : i32 to vector<16x128xi32>
    %28 = arith.cmpi eq, %26, %27 : vector<16x128xi32>
    %29 = arith.xori %21, %28 : vector<16x128xi1>
    %cst_7 = arith.constant dense<true> : vector<16x128xi1>
    %30 = arith.xori %29, %cst_7 : vector<16x128xi1>
    %31 = arith.minimumf %17, %24 : vector<16x128xf32>
    %32 = arith.maximumf %17, %24 : vector<16x128xf32>
    %33 = arith.select %30, %31, %32 : vector<16x128xi1>, vector<16x128xf32>
    %c1_i32_8 = arith.constant 1 : i32
    %34 = vector.broadcast %c1_i32_8 : i32 to vector<16x128xi32>
    %35 = arith.andi %1, %34 : vector<16x128xi32>
    %c0_i32_9 = arith.constant 0 : i32
    %36 = vector.broadcast %c0_i32_9 : i32 to vector<16x128xi32>
    %37 = arith.cmpi eq, %35, %36 : vector<16x128xi32>
    %c127_i32_10 = arith.constant 127 : i32
    %38 = tpu.dynamic_rotate %33 by %c127_i32_10 dim 1 : vector<16x128xf32>, i32 -> vector<16x128xf32>
    %c1_i32_11 = arith.constant 1 : i32
    %39 = tpu.dynamic_rotate %33 by %c1_i32_11 dim 1 : vector<16x128xf32>, i32 -> vector<16x128xf32>
    %40 = arith.select %37, %38, %39 : vector<16x128xi1>, vector<16x128xf32>
    %c4_i32_12 = arith.constant 4 : i32
    %41 = vector.broadcast %c4_i32_12 : i32 to vector<16x128xi32>
    %42 = arith.andi %1, %41 : vector<16x128xi32>
    %c0_i32_13 = arith.constant 0 : i32
    %43 = vector.broadcast %c0_i32_13 : i32 to vector<16x128xi32>
    %44 = arith.cmpi eq, %42, %43 : vector<16x128xi32>
    %45 = arith.xori %37, %44 : vector<16x128xi1>
    %cst_14 = arith.constant dense<true> : vector<16x128xi1>
    %46 = arith.xori %45, %cst_14 : vector<16x128xi1>
    %47 = arith.minimumf %33, %40 : vector<16x128xf32>
    %48 = arith.maximumf %33, %40 : vector<16x128xf32>
    %49 = arith.select %46, %47, %48 : vector<16x128xi1>, vector<16x128xf32>
    %c4_i32_15 = arith.constant 4 : i32
    %50 = vector.broadcast %c4_i32_15 : i32 to vector<16x128xi32>
    %51 = arith.andi %1, %50 : vector<16x128xi32>
    %c0_i32_16 = arith.constant 0 : i32
    %52 = vector.broadcast %c0_i32_16 : i32 to vector<16x128xi32>
    %53 = arith.cmpi eq, %51, %52 : vector<16x128xi32>
    %c124_i32 = arith.constant 124 : i32
    %54 = tpu.dynamic_rotate %49 by %c124_i32 dim 1 : vector<16x128xf32>, i32 -> vector<16x128xf32>
    %c4_i32_17 = arith.constant 4 : i32
    %55 = tpu.dynamic_rotate %49 by %c4_i32_17 dim 1 : vector<16x128xf32>, i32 -> vector<16x128xf32>
    %56 = arith.select %53, %54, %55 : vector<16x128xi1>, vector<16x128xf32>
    %c8_i32 = arith.constant 8 : i32
    %57 = vector.broadcast %c8_i32 : i32 to vector<16x128xi32>
    %58 = arith.andi %1, %57 : vector<16x128xi32>
    %c0_i32_18 = arith.constant 0 : i32
    %59 = vector.broadcast %c0_i32_18 : i32 to vector<16x128xi32>
    %60 = arith.cmpi eq, %58, %59 : vector<16x128xi32>
    %61 = arith.xori %53, %60 : vector<16x128xi1>
    %cst_19 = arith.constant dense<true> : vector<16x128xi1>
    %62 = arith.xori %61, %cst_19 : vector<16x128xi1>
    %63 = arith.minimumf %49, %56 : vector<16x128xf32>
    %64 = arith.maximumf %49, %56 : vector<16x128xf32>
    %65 = arith.select %62, %63, %64 : vector<16x128xi1>, vector<16x128xf32>
    %c2_i32_20 = arith.constant 2 : i32
    %66 = vector.broadcast %c2_i32_20 : i32 to vector<16x128xi32>
    %67 = arith.andi %1, %66 : vector<16x128xi32>
    %c0_i32_21 = arith.constant 0 : i32
    %68 = vector.broadcast %c0_i32_21 : i32 to vector<16x128xi32>
    %69 = arith.cmpi eq, %67, %68 : vector<16x128xi32>
    %c126_i32_22 = arith.constant 126 : i32
    %70 = tpu.dynamic_rotate %65 by %c126_i32_22 dim 1 : vector<16x128xf32>, i32 -> vector<16x128xf32>
    %c2_i32_23 = arith.constant 2 : i32
    %71 = tpu.dynamic_rotate %65 by %c2_i32_23 dim 1 : vector<16x128xf32>, i32 -> vector<16x128xf32>
    %72 = arith.select %69, %70, %71 : vector<16x128xi1>, vector<16x128xf32>
    %c8_i32_24 = arith.constant 8 : i32
    %73 = vector.broadcast %c8_i32_24 : i32 to vector<16x128xi32>
    %74 = arith.andi %1, %73 : vector<16x128xi32>
    %c0_i32_25 = arith.constant 0 : i32
    %75 = vector.broadcast %c0_i32_25 : i32 to vector<16x128xi32>
    %76 = arith.cmpi eq, %74, %75 : vector<16x128xi32>
    %77 = arith.xori %69, %76 : vector<16x128xi1>
    %cst_26 = arith.constant dense<true> : vector<16x128xi1>
    %78 = arith.xori %77, %cst_26 : vector<16x128xi1>
    %79 = arith.minimumf %65, %72 : vector<16x128xf32>
    %80 = arith.maximumf %65, %72 : vector<16x128xf32>
    %81 = arith.select %78, %79, %80 : vector<16x128xi1>, vector<16x128xf32>
    %c1_i32_27 = arith.constant 1 : i32
    %82 = vector.broadcast %c1_i32_27 : i32 to vector<16x128xi32>
    %83 = arith.andi %1, %82 : vector<16x128xi32>
    %c0_i32_28 = arith.constant 0 : i32
    %84 = vector.broadcast %c0_i32_28 : i32 to vector<16x128xi32>
    %85 = arith.cmpi eq, %83, %84 : vector<16x128xi32>
    %c127_i32_29 = arith.constant 127 : i32
    %86 = tpu.dynamic_rotate %81 by %c127_i32_29 dim 1 : vector<16x128xf32>, i32 -> vector<16x128xf32>
    %c1_i32_30 = arith.constant 1 : i32
    %87 = tpu.dynamic_rotate %81 by %c1_i32_30 dim 1 : vector<16x128xf32>, i32 -> vector<16x128xf32>
    %88 = arith.select %85, %86, %87 : vector<16x128xi1>, vector<16x128xf32>
    %c8_i32_31 = arith.constant 8 : i32
    %89 = vector.broadcast %c8_i32_31 : i32 to vector<16x128xi32>
    %90 = arith.andi %1, %89 : vector<16x128xi32>
    %c0_i32_32 = arith.constant 0 : i32
    %91 = vector.broadcast %c0_i32_32 : i32 to vector<16x128xi32>
    %92 = arith.cmpi eq, %90, %91 : vector<16x128xi32>
    %93 = arith.xori %85, %92 : vector<16x128xi1>
    %cst_33 = arith.constant dense<true> : vector<16x128xi1>
    %94 = arith.xori %93, %cst_33 : vector<16x128xi1>
    %95 = arith.minimumf %81, %88 : vector<16x128xf32>
    %96 = arith.maximumf %81, %88 : vector<16x128xf32>
    %97 = arith.select %94, %95, %96 : vector<16x128xi1>, vector<16x128xf32>
    %c8_i32_34 = arith.constant 8 : i32
    %98 = vector.broadcast %c8_i32_34 : i32 to vector<16x128xi32>
    %99 = arith.andi %1, %98 : vector<16x128xi32>
    %c0_i32_35 = arith.constant 0 : i32
    %100 = vector.broadcast %c0_i32_35 : i32 to vector<16x128xi32>
    %101 = arith.cmpi eq, %99, %100 : vector<16x128xi32>
    %c120_i32 = arith.constant 120 : i32
    %102 = tpu.dynamic_rotate %97 by %c120_i32 dim 1 : vector<16x128xf32>, i32 -> vector<16x128xf32>
    %c8_i32_36 = arith.constant 8 : i32
    %103 = tpu.dynamic_rotate %97 by %c8_i32_36 dim 1 : vector<16x128xf32>, i32 -> vector<16x128xf32>
    %104 = arith.select %101, %102, %103 : vector<16x128xi1>, vector<16x128xf32>
    %c16_i32 = arith.constant 16 : i32
    %105 = vector.broadcast %c16_i32 : i32 to vector<16x128xi32>
    %106 = arith.andi %1, %105 : vector<16x128xi32>
    %c0_i32_37 = arith.constant 0 : i32
    %107 = vector.broadcast %c0_i32_37 : i32 to vector<16x128xi32>
    %108 = arith.cmpi eq, %106, %107 : vector<16x128xi32>
    %109 = arith.xori %101, %108 : vector<16x128xi1>
    %cst_38 = arith.constant dense<true> : vector<16x128xi1>
    %110 = arith.xori %109, %cst_38 : vector<16x128xi1>
    %111 = arith.minimumf %97, %104 : vector<16x128xf32>
    %112 = arith.maximumf %97, %104 : vector<16x128xf32>
    %113 = arith.select %110, %111, %112 : vector<16x128xi1>, vector<16x128xf32>
    %c4_i32_39 = arith.constant 4 : i32
    %114 = vector.broadcast %c4_i32_39 : i32 to vector<16x128xi32>
    %115 = arith.andi %1, %114 : vector<16x128xi32>
    %c0_i32_40 = arith.constant 0 : i32
    %116 = vector.broadcast %c0_i32_40 : i32 to vector<16x128xi32>
    %117 = arith.cmpi eq, %115, %116 : vector<16x128xi32>
    %c124_i32_41 = arith.constant 124 : i32
    %118 = tpu.dynamic_rotate %113 by %c124_i32_41 dim 1 : vector<16x128xf32>, i32 -> vector<16x128xf32>
    %c4_i32_42 = arith.constant 4 : i32
    %119 = tpu.dynamic_rotate %113 by %c4_i32_42 dim 1 : vector<16x128xf32>, i32 -> vector<16x128xf32>
    %120 = arith.select %117, %118, %119 : vector<16x128xi1>, vector<16x128xf32>
    %c16_i32_43 = arith.constant 16 : i32
    %121 = vector.broadcast %c16_i32_43 : i32 to vector<16x128xi32>
    %122 = arith.andi %1, %121 : vector<16x128xi32>
    %c0_i32_44 = arith.constant 0 : i32
    %123 = vector.broadcast %c0_i32_44 : i32 to vector<16x128xi32>
    %124 = arith.cmpi eq, %122, %123 : vector<16x128xi32>
    %125 = arith.xori %117, %124 : vector<16x128xi1>
    %cst_45 = arith.constant dense<true> : vector<16x128xi1>
    %126 = arith.xori %125, %cst_45 : vector<16x128xi1>
    %127 = arith.minimumf %113, %120 : vector<16x128xf32>
    %128 = arith.maximumf %113, %120 : vector<16x128xf32>
    %129 = arith.select %126, %127, %128 : vector<16x128xi1>, vector<16x128xf32>
    %c2_i32_46 = arith.constant 2 : i32
    %130 = vector.broadcast %c2_i32_46 : i32 to vector<16x128xi32>
    %131 = arith.andi %1, %130 : vector<16x128xi32>
    %c0_i32_47 = arith.constant 0 : i32
    %132 = vector.broadcast %c0_i32_47 : i32 to vector<16x128xi32>
    %133 = arith.cmpi eq, %131, %132 : vector<16x128xi32>
    %c126_i32_48 = arith.constant 126 : i32
    %134 = tpu.dynamic_rotate %129 by %c126_i32_48 dim 1 : vector<16x128xf32>, i32 -> vector<16x128xf32>
    %c2_i32_49 = arith.constant 2 : i32
    %135 = tpu.dynamic_rotate %129 by %c2_i32_49 dim 1 : vector<16x128xf32>, i32 -> vector<16x128xf32>
    %136 = arith.select %133, %134, %135 : vector<16x128xi1>, vector<16x128xf32>
    %c16_i32_50 = arith.constant 16 : i32
    %137 = vector.broadcast %c16_i32_50 : i32 to vector<16x128xi32>
    %138 = arith.andi %1, %137 : vector<16x128xi32>
    %c0_i32_51 = arith.constant 0 : i32
    %139 = vector.broadcast %c0_i32_51 : i32 to vector<16x128xi32>
    %140 = arith.cmpi eq, %138, %139 : vector<16x128xi32>
    %141 = arith.xori %133, %140 : vector<16x128xi1>
    %cst_52 = arith.constant dense<true> : vector<16x128xi1>
    %142 = arith.xori %141, %cst_52 : vector<16x128xi1>
    %143 = arith.minimumf %129, %136 : vector<16x128xf32>
    %144 = arith.maximumf %129, %136 : vector<16x128xf32>
    %145 = arith.select %142, %143, %144 : vector<16x128xi1>, vector<16x128xf32>
    %c1_i32_53 = arith.constant 1 : i32
    %146 = vector.broadcast %c1_i32_53 : i32 to vector<16x128xi32>
    %147 = arith.andi %1, %146 : vector<16x128xi32>
    %c0_i32_54 = arith.constant 0 : i32
    %148 = vector.broadcast %c0_i32_54 : i32 to vector<16x128xi32>
    %149 = arith.cmpi eq, %147, %148 : vector<16x128xi32>
    %c127_i32_55 = arith.constant 127 : i32
    %150 = tpu.dynamic_rotate %145 by %c127_i32_55 dim 1 : vector<16x128xf32>, i32 -> vector<16x128xf32>
    %c1_i32_56 = arith.constant 1 : i32
    %151 = tpu.dynamic_rotate %145 by %c1_i32_56 dim 1 : vector<16x128xf32>, i32 -> vector<16x128xf32>
    %152 = arith.select %149, %150, %151 : vector<16x128xi1>, vector<16x128xf32>
    %c16_i32_57 = arith.constant 16 : i32
    %153 = vector.broadcast %c16_i32_57 : i32 to vector<16x128xi32>
    %154 = arith.andi %1, %153 : vector<16x128xi32>
    %c0_i32_58 = arith.constant 0 : i32
    %155 = vector.broadcast %c0_i32_58 : i32 to vector<16x128xi32>
    %156 = arith.cmpi eq, %154, %155 : vector<16x128xi32>
    %157 = arith.xori %149, %156 : vector<16x128xi1>
    %cst_59 = arith.constant dense<true> : vector<16x128xi1>
    %158 = arith.xori %157, %cst_59 : vector<16x128xi1>
    %159 = arith.minimumf %145, %152 : vector<16x128xf32>
    %160 = arith.maximumf %145, %152 : vector<16x128xf32>
    %161 = arith.select %158, %159, %160 : vector<16x128xi1>, vector<16x128xf32>
    %c16_i32_60 = arith.constant 16 : i32
    %162 = vector.broadcast %c16_i32_60 : i32 to vector<16x128xi32>
    %163 = arith.andi %1, %162 : vector<16x128xi32>
    %c0_i32_61 = arith.constant 0 : i32
    %164 = vector.broadcast %c0_i32_61 : i32 to vector<16x128xi32>
    %165 = arith.cmpi eq, %163, %164 : vector<16x128xi32>
    %c112_i32 = arith.constant 112 : i32
    %166 = tpu.dynamic_rotate %161 by %c112_i32 dim 1 : vector<16x128xf32>, i32 -> vector<16x128xf32>
    %c16_i32_62 = arith.constant 16 : i32
    %167 = tpu.dynamic_rotate %161 by %c16_i32_62 dim 1 : vector<16x128xf32>, i32 -> vector<16x128xf32>
    %168 = arith.select %165, %166, %167 : vector<16x128xi1>, vector<16x128xf32>
    %c32_i32 = arith.constant 32 : i32
    %169 = vector.broadcast %c32_i32 : i32 to vector<16x128xi32>
    %170 = arith.andi %1, %169 : vector<16x128xi32>
    %c0_i32_63 = arith.constant 0 : i32
    %171 = vector.broadcast %c0_i32_63 : i32 to vector<16x128xi32>
    %172 = arith.cmpi eq, %170, %171 : vector<16x128xi32>
    %173 = arith.xori %165, %172 : vector<16x128xi1>
    %cst_64 = arith.constant dense<true> : vector<16x128xi1>
    %174 = arith.xori %173, %cst_64 : vector<16x128xi1>
    %175 = arith.minimumf %161, %168 : vector<16x128xf32>
    %176 = arith.maximumf %161, %168 : vector<16x128xf32>
    %177 = arith.select %174, %175, %176 : vector<16x128xi1>, vector<16x128xf32>
    %c8_i32_65 = arith.constant 8 : i32
    %178 = vector.broadcast %c8_i32_65 : i32 to vector<16x128xi32>
    %179 = arith.andi %1, %178 : vector<16x128xi32>
    %c0_i32_66 = arith.constant 0 : i32
    %180 = vector.broadcast %c0_i32_66 : i32 to vector<16x128xi32>
    %181 = arith.cmpi eq, %179, %180 : vector<16x128xi32>
    %c120_i32_67 = arith.constant 120 : i32
    %182 = tpu.dynamic_rotate %177 by %c120_i32_67 dim 1 : vector<16x128xf32>, i32 -> vector<16x128xf32>
    %c8_i32_68 = arith.constant 8 : i32
    %183 = tpu.dynamic_rotate %177 by %c8_i32_68 dim 1 : vector<16x128xf32>, i32 -> vector<16x128xf32>
    %184 = arith.select %181, %182, %183 : vector<16x128xi1>, vector<16x128xf32>
    %c32_i32_69 = arith.constant 32 : i32
    %185 = vector.broadcast %c32_i32_69 : i32 to vector<16x128xi32>
    %186 = arith.andi %1, %185 : vector<16x128xi32>
    %c0_i32_70 = arith.constant 0 : i32
    %187 = vector.broadcast %c0_i32_70 : i32 to vector<16x128xi32>
    %188 = arith.cmpi eq, %186, %187 : vector<16x128xi32>
    %189 = arith.xori %181, %188 : vector<16x128xi1>
    %cst_71 = arith.constant dense<true> : vector<16x128xi1>
    %190 = arith.xori %189, %cst_71 : vector<16x128xi1>
    %191 = arith.minimumf %177, %184 : vector<16x128xf32>
    %192 = arith.maximumf %177, %184 : vector<16x128xf32>
    %193 = arith.select %190, %191, %192 : vector<16x128xi1>, vector<16x128xf32>
    %c4_i32_72 = arith.constant 4 : i32
    %194 = vector.broadcast %c4_i32_72 : i32 to vector<16x128xi32>
    %195 = arith.andi %1, %194 : vector<16x128xi32>
    %c0_i32_73 = arith.constant 0 : i32
    %196 = vector.broadcast %c0_i32_73 : i32 to vector<16x128xi32>
    %197 = arith.cmpi eq, %195, %196 : vector<16x128xi32>
    %c124_i32_74 = arith.constant 124 : i32
    %198 = tpu.dynamic_rotate %193 by %c124_i32_74 dim 1 : vector<16x128xf32>, i32 -> vector<16x128xf32>
    %c4_i32_75 = arith.constant 4 : i32
    %199 = tpu.dynamic_rotate %193 by %c4_i32_75 dim 1 : vector<16x128xf32>, i32 -> vector<16x128xf32>
    %200 = arith.select %197, %198, %199 : vector<16x128xi1>, vector<16x128xf32>
    %c32_i32_76 = arith.constant 32 : i32
    %201 = vector.broadcast %c32_i32_76 : i32 to vector<16x128xi32>
    %202 = arith.andi %1, %201 : vector<16x128xi32>
    %c0_i32_77 = arith.constant 0 : i32
    %203 = vector.broadcast %c0_i32_77 : i32 to vector<16x128xi32>
    %204 = arith.cmpi eq, %202, %203 : vector<16x128xi32>
    %205 = arith.xori %197, %204 : vector<16x128xi1>
    %cst_78 = arith.constant dense<true> : vector<16x128xi1>
    %206 = arith.xori %205, %cst_78 : vector<16x128xi1>
    %207 = arith.minimumf %193, %200 : vector<16x128xf32>
    %208 = arith.maximumf %193, %200 : vector<16x128xf32>
    %209 = arith.select %206, %207, %208 : vector<16x128xi1>, vector<16x128xf32>
    %c2_i32_79 = arith.constant 2 : i32
    %210 = vector.broadcast %c2_i32_79 : i32 to vector<16x128xi32>
    %211 = arith.andi %1, %210 : vector<16x128xi32>
    %c0_i32_80 = arith.constant 0 : i32
    %212 = vector.broadcast %c0_i32_80 : i32 to vector<16x128xi32>
    %213 = arith.cmpi eq, %211, %212 : vector<16x128xi32>
    %c126_i32_81 = arith.constant 126 : i32
    %214 = tpu.dynamic_rotate %209 by %c126_i32_81 dim 1 : vector<16x128xf32>, i32 -> vector<16x128xf32>
    %c2_i32_82 = arith.constant 2 : i32
    %215 = tpu.dynamic_rotate %209 by %c2_i32_82 dim 1 : vector<16x128xf32>, i32 -> vector<16x128xf32>
    %216 = arith.select %213, %214, %215 : vector<16x128xi1>, vector<16x128xf32>
    %c32_i32_83 = arith.constant 32 : i32
    %217 = vector.broadcast %c32_i32_83 : i32 to vector<16x128xi32>
    %218 = arith.andi %1, %217 : vector<16x128xi32>
    %c0_i32_84 = arith.constant 0 : i32
    %219 = vector.broadcast %c0_i32_84 : i32 to vector<16x128xi32>
    %220 = arith.cmpi eq, %218, %219 : vector<16x128xi32>
    %221 = arith.xori %213, %220 : vector<16x128xi1>
    %cst_85 = arith.constant dense<true> : vector<16x128xi1>
    %222 = arith.xori %221, %cst_85 : vector<16x128xi1>
    %223 = arith.minimumf %209, %216 : vector<16x128xf32>
    %224 = arith.maximumf %209, %216 : vector<16x128xf32>
    %225 = arith.select %222, %223, %224 : vector<16x128xi1>, vector<16x128xf32>
    %c1_i32_86 = arith.constant 1 : i32
    %226 = vector.broadcast %c1_i32_86 : i32 to vector<16x128xi32>
    %227 = arith.andi %1, %226 : vector<16x128xi32>
    %c0_i32_87 = arith.constant 0 : i32
    %228 = vector.broadcast %c0_i32_87 : i32 to vector<16x128xi32>
    %229 = arith.cmpi eq, %227, %228 : vector<16x128xi32>
    %c127_i32_88 = arith.constant 127 : i32
    %230 = tpu.dynamic_rotate %225 by %c127_i32_88 dim 1 : vector<16x128xf32>, i32 -> vector<16x128xf32>
    %c1_i32_89 = arith.constant 1 : i32
    %231 = tpu.dynamic_rotate %225 by %c1_i32_89 dim 1 : vector<16x128xf32>, i32 -> vector<16x128xf32>
    %232 = arith.select %229, %230, %231 : vector<16x128xi1>, vector<16x128xf32>
    %c32_i32_90 = arith.constant 32 : i32
    %233 = vector.broadcast %c32_i32_90 : i32 to vector<16x128xi32>
    %234 = arith.andi %1, %233 : vector<16x128xi32>
    %c0_i32_91 = arith.constant 0 : i32
    %235 = vector.broadcast %c0_i32_91 : i32 to vector<16x128xi32>
    %236 = arith.cmpi eq, %234, %235 : vector<16x128xi32>
    %237 = arith.xori %229, %236 : vector<16x128xi1>
    %cst_92 = arith.constant dense<true> : vector<16x128xi1>
    %238 = arith.xori %237, %cst_92 : vector<16x128xi1>
    %239 = arith.minimumf %225, %232 : vector<16x128xf32>
    %240 = arith.maximumf %225, %232 : vector<16x128xf32>
    %241 = arith.select %238, %239, %240 : vector<16x128xi1>, vector<16x128xf32>
    %c32_i32_93 = arith.constant 32 : i32
    %242 = vector.broadcast %c32_i32_93 : i32 to vector<16x128xi32>
    %243 = arith.andi %1, %242 : vector<16x128xi32>
    %c0_i32_94 = arith.constant 0 : i32
    %244 = vector.broadcast %c0_i32_94 : i32 to vector<16x128xi32>
    %245 = arith.cmpi eq, %243, %244 : vector<16x128xi32>
    %c96_i32 = arith.constant 96 : i32
    %246 = tpu.dynamic_rotate %241 by %c96_i32 dim 1 : vector<16x128xf32>, i32 -> vector<16x128xf32>
    %c32_i32_95 = arith.constant 32 : i32
    %247 = tpu.dynamic_rotate %241 by %c32_i32_95 dim 1 : vector<16x128xf32>, i32 -> vector<16x128xf32>
    %248 = arith.select %245, %246, %247 : vector<16x128xi1>, vector<16x128xf32>
    %c64_i32 = arith.constant 64 : i32
    %249 = vector.broadcast %c64_i32 : i32 to vector<16x128xi32>
    %250 = arith.andi %1, %249 : vector<16x128xi32>
    %c0_i32_96 = arith.constant 0 : i32
    %251 = vector.broadcast %c0_i32_96 : i32 to vector<16x128xi32>
    %252 = arith.cmpi eq, %250, %251 : vector<16x128xi32>
    %253 = arith.xori %245, %252 : vector<16x128xi1>
    %cst_97 = arith.constant dense<true> : vector<16x128xi1>
    %254 = arith.xori %253, %cst_97 : vector<16x128xi1>
    %255 = arith.minimumf %241, %248 : vector<16x128xf32>
    %256 = arith.maximumf %241, %248 : vector<16x128xf32>
    %257 = arith.select %254, %255, %256 : vector<16x128xi1>, vector<16x128xf32>
    %c16_i32_98 = arith.constant 16 : i32
    %258 = vector.broadcast %c16_i32_98 : i32 to vector<16x128xi32>
    %259 = arith.andi %1, %258 : vector<16x128xi32>
    %c0_i32_99 = arith.constant 0 : i32
    %260 = vector.broadcast %c0_i32_99 : i32 to vector<16x128xi32>
    %261 = arith.cmpi eq, %259, %260 : vector<16x128xi32>
    %c112_i32_100 = arith.constant 112 : i32
    %262 = tpu.dynamic_rotate %257 by %c112_i32_100 dim 1 : vector<16x128xf32>, i32 -> vector<16x128xf32>
    %c16_i32_101 = arith.constant 16 : i32
    %263 = tpu.dynamic_rotate %257 by %c16_i32_101 dim 1 : vector<16x128xf32>, i32 -> vector<16x128xf32>
    %264 = arith.select %261, %262, %263 : vector<16x128xi1>, vector<16x128xf32>
    %c64_i32_102 = arith.constant 64 : i32
    %265 = vector.broadcast %c64_i32_102 : i32 to vector<16x128xi32>
    %266 = arith.andi %1, %265 : vector<16x128xi32>
    %c0_i32_103 = arith.constant 0 : i32
    %267 = vector.broadcast %c0_i32_103 : i32 to vector<16x128xi32>
    %268 = arith.cmpi eq, %266, %267 : vector<16x128xi32>
    %269 = arith.xori %261, %268 : vector<16x128xi1>
    %cst_104 = arith.constant dense<true> : vector<16x128xi1>
    %270 = arith.xori %269, %cst_104 : vector<16x128xi1>
    %271 = arith.minimumf %257, %264 : vector<16x128xf32>
    %272 = arith.maximumf %257, %264 : vector<16x128xf32>
    %273 = arith.select %270, %271, %272 : vector<16x128xi1>, vector<16x128xf32>
    %c8_i32_105 = arith.constant 8 : i32
    %274 = vector.broadcast %c8_i32_105 : i32 to vector<16x128xi32>
    %275 = arith.andi %1, %274 : vector<16x128xi32>
    %c0_i32_106 = arith.constant 0 : i32
    %276 = vector.broadcast %c0_i32_106 : i32 to vector<16x128xi32>
    %277 = arith.cmpi eq, %275, %276 : vector<16x128xi32>
    %c120_i32_107 = arith.constant 120 : i32
    %278 = tpu.dynamic_rotate %273 by %c120_i32_107 dim 1 : vector<16x128xf32>, i32 -> vector<16x128xf32>
    %c8_i32_108 = arith.constant 8 : i32
    %279 = tpu.dynamic_rotate %273 by %c8_i32_108 dim 1 : vector<16x128xf32>, i32 -> vector<16x128xf32>
    %280 = arith.select %277, %278, %279 : vector<16x128xi1>, vector<16x128xf32>
    %c64_i32_109 = arith.constant 64 : i32
    %281 = vector.broadcast %c64_i32_109 : i32 to vector<16x128xi32>
    %282 = arith.andi %1, %281 : vector<16x128xi32>
    %c0_i32_110 = arith.constant 0 : i32
    %283 = vector.broadcast %c0_i32_110 : i32 to vector<16x128xi32>
    %284 = arith.cmpi eq, %282, %283 : vector<16x128xi32>
    %285 = arith.xori %277, %284 : vector<16x128xi1>
    %cst_111 = arith.constant dense<true> : vector<16x128xi1>
    %286 = arith.xori %285, %cst_111 : vector<16x128xi1>
    %287 = arith.minimumf %273, %280 : vector<16x128xf32>
    %288 = arith.maximumf %273, %280 : vector<16x128xf32>
    %289 = arith.select %286, %287, %288 : vector<16x128xi1>, vector<16x128xf32>
    %c4_i32_112 = arith.constant 4 : i32
    %290 = vector.broadcast %c4_i32_112 : i32 to vector<16x128xi32>
    %291 = arith.andi %1, %290 : vector<16x128xi32>
    %c0_i32_113 = arith.constant 0 : i32
    %292 = vector.broadcast %c0_i32_113 : i32 to vector<16x128xi32>
    %293 = arith.cmpi eq, %291, %292 : vector<16x128xi32>
    %c124_i32_114 = arith.constant 124 : i32
    %294 = tpu.dynamic_rotate %289 by %c124_i32_114 dim 1 : vector<16x128xf32>, i32 -> vector<16x128xf32>
    %c4_i32_115 = arith.constant 4 : i32
    %295 = tpu.dynamic_rotate %289 by %c4_i32_115 dim 1 : vector<16x128xf32>, i32 -> vector<16x128xf32>
    %296 = arith.select %293, %294, %295 : vector<16x128xi1>, vector<16x128xf32>
    %c64_i32_116 = arith.constant 64 : i32
    %297 = vector.broadcast %c64_i32_116 : i32 to vector<16x128xi32>
    %298 = arith.andi %1, %297 : vector<16x128xi32>
    %c0_i32_117 = arith.constant 0 : i32
    %299 = vector.broadcast %c0_i32_117 : i32 to vector<16x128xi32>
    %300 = arith.cmpi eq, %298, %299 : vector<16x128xi32>
    %301 = arith.xori %293, %300 : vector<16x128xi1>
    %cst_118 = arith.constant dense<true> : vector<16x128xi1>
    %302 = arith.xori %301, %cst_118 : vector<16x128xi1>
    %303 = arith.minimumf %289, %296 : vector<16x128xf32>
    %304 = arith.maximumf %289, %296 : vector<16x128xf32>
    %305 = arith.select %302, %303, %304 : vector<16x128xi1>, vector<16x128xf32>
    %c2_i32_119 = arith.constant 2 : i32
    %306 = vector.broadcast %c2_i32_119 : i32 to vector<16x128xi32>
    %307 = arith.andi %1, %306 : vector<16x128xi32>
    %c0_i32_120 = arith.constant 0 : i32
    %308 = vector.broadcast %c0_i32_120 : i32 to vector<16x128xi32>
    %309 = arith.cmpi eq, %307, %308 : vector<16x128xi32>
    %c126_i32_121 = arith.constant 126 : i32
    %310 = tpu.dynamic_rotate %305 by %c126_i32_121 dim 1 : vector<16x128xf32>, i32 -> vector<16x128xf32>
    %c2_i32_122 = arith.constant 2 : i32
    %311 = tpu.dynamic_rotate %305 by %c2_i32_122 dim 1 : vector<16x128xf32>, i32 -> vector<16x128xf32>
    %312 = arith.select %309, %310, %311 : vector<16x128xi1>, vector<16x128xf32>
    %c64_i32_123 = arith.constant 64 : i32
    %313 = vector.broadcast %c64_i32_123 : i32 to vector<16x128xi32>
    %314 = arith.andi %1, %313 : vector<16x128xi32>
    %c0_i32_124 = arith.constant 0 : i32
    %315 = vector.broadcast %c0_i32_124 : i32 to vector<16x128xi32>
    %316 = arith.cmpi eq, %314, %315 : vector<16x128xi32>
    %317 = arith.xori %309, %316 : vector<16x128xi1>
    %cst_125 = arith.constant dense<true> : vector<16x128xi1>
    %318 = arith.xori %317, %cst_125 : vector<16x128xi1>
    %319 = arith.minimumf %305, %312 : vector<16x128xf32>
    %320 = arith.maximumf %305, %312 : vector<16x128xf32>
    %321 = arith.select %318, %319, %320 : vector<16x128xi1>, vector<16x128xf32>
    %c1_i32_126 = arith.constant 1 : i32
    %322 = vector.broadcast %c1_i32_126 : i32 to vector<16x128xi32>
    %323 = arith.andi %1, %322 : vector<16x128xi32>
    %c0_i32_127 = arith.constant 0 : i32
    %324 = vector.broadcast %c0_i32_127 : i32 to vector<16x128xi32>
    %325 = arith.cmpi eq, %323, %324 : vector<16x128xi32>
    %c127_i32_128 = arith.constant 127 : i32
    %326 = tpu.dynamic_rotate %321 by %c127_i32_128 dim 1 : vector<16x128xf32>, i32 -> vector<16x128xf32>
    %c1_i32_129 = arith.constant 1 : i32
    %327 = tpu.dynamic_rotate %321 by %c1_i32_129 dim 1 : vector<16x128xf32>, i32 -> vector<16x128xf32>
    %328 = arith.select %325, %326, %327 : vector<16x128xi1>, vector<16x128xf32>
    %c64_i32_130 = arith.constant 64 : i32
    %329 = vector.broadcast %c64_i32_130 : i32 to vector<16x128xi32>
    %330 = arith.andi %1, %329 : vector<16x128xi32>
    %c0_i32_131 = arith.constant 0 : i32
    %331 = vector.broadcast %c0_i32_131 : i32 to vector<16x128xi32>
    %332 = arith.cmpi eq, %330, %331 : vector<16x128xi32>
    %333 = arith.xori %325, %332 : vector<16x128xi1>
    %cst_132 = arith.constant dense<true> : vector<16x128xi1>
    %334 = arith.xori %333, %cst_132 : vector<16x128xi1>
    %335 = arith.minimumf %321, %328 : vector<16x128xf32>
    %336 = arith.maximumf %321, %328 : vector<16x128xf32>
    %337 = arith.select %334, %335, %336 : vector<16x128xi1>, vector<16x128xf32>
    %c64_i32_133 = arith.constant 64 : i32
    %338 = vector.broadcast %c64_i32_133 : i32 to vector<16x128xi32>
    %339 = arith.andi %1, %338 : vector<16x128xi32>
    %c0_i32_134 = arith.constant 0 : i32
    %340 = vector.broadcast %c0_i32_134 : i32 to vector<16x128xi32>
    %341 = arith.cmpi eq, %339, %340 : vector<16x128xi32>
    %c64_i32_135 = arith.constant 64 : i32
    %342 = tpu.dynamic_rotate %337 by %c64_i32_135 dim 1 : vector<16x128xf32>, i32 -> vector<16x128xf32>
    %c64_i32_136 = arith.constant 64 : i32
    %343 = tpu.dynamic_rotate %337 by %c64_i32_136 dim 1 : vector<16x128xf32>, i32 -> vector<16x128xf32>
    %344 = arith.select %341, %342, %343 : vector<16x128xi1>, vector<16x128xf32>
    %c128_i32 = arith.constant 128 : i32
    %345 = vector.broadcast %c128_i32 : i32 to vector<16x128xi32>
    %346 = arith.andi %1, %345 : vector<16x128xi32>
    %c0_i32_137 = arith.constant 0 : i32
    %347 = vector.broadcast %c0_i32_137 : i32 to vector<16x128xi32>
    %348 = arith.cmpi eq, %346, %347 : vector<16x128xi32>
    %349 = arith.xori %341, %348 : vector<16x128xi1>
    %cst_138 = arith.constant dense<true> : vector<16x128xi1>
    %350 = arith.xori %349, %cst_138 : vector<16x128xi1>
    %351 = arith.minimumf %337, %344 : vector<16x128xf32>
    %352 = arith.maximumf %337, %344 : vector<16x128xf32>
    %353 = arith.select %350, %351, %352 : vector<16x128xi1>, vector<16x128xf32>
    %c32_i32_139 = arith.constant 32 : i32
    %354 = vector.broadcast %c32_i32_139 : i32 to vector<16x128xi32>
    %355 = arith.andi %1, %354 : vector<16x128xi32>
    %c0_i32_140 = arith.constant 0 : i32
    %356 = vector.broadcast %c0_i32_140 : i32 to vector<16x128xi32>
    %357 = arith.cmpi eq, %355, %356 : vector<16x128xi32>
    %c96_i32_141 = arith.constant 96 : i32
    %358 = tpu.dynamic_rotate %353 by %c96_i32_141 dim 1 : vector<16x128xf32>, i32 -> vector<16x128xf32>
    %c32_i32_142 = arith.constant 32 : i32
    %359 = tpu.dynamic_rotate %353 by %c32_i32_142 dim 1 : vector<16x128xf32>, i32 -> vector<16x128xf32>
    %360 = arith.select %357, %358, %359 : vector<16x128xi1>, vector<16x128xf32>
    %c128_i32_143 = arith.constant 128 : i32
    %361 = vector.broadcast %c128_i32_143 : i32 to vector<16x128xi32>
    %362 = arith.andi %1, %361 : vector<16x128xi32>
    %c0_i32_144 = arith.constant 0 : i32
    %363 = vector.broadcast %c0_i32_144 : i32 to vector<16x128xi32>
    %364 = arith.cmpi eq, %362, %363 : vector<16x128xi32>
    %365 = arith.xori %357, %364 : vector<16x128xi1>
    %cst_145 = arith.constant dense<true> : vector<16x128xi1>
    %366 = arith.xori %365, %cst_145 : vector<16x128xi1>
    %367 = arith.minimumf %353, %360 : vector<16x128xf32>
    %368 = arith.maximumf %353, %360 : vector<16x128xf32>
    %369 = arith.select %366, %367, %368 : vector<16x128xi1>, vector<16x128xf32>
    %c16_i32_146 = arith.constant 16 : i32
    %370 = vector.broadcast %c16_i32_146 : i32 to vector<16x128xi32>
    %371 = arith.andi %1, %370 : vector<16x128xi32>
    %c0_i32_147 = arith.constant 0 : i32
    %372 = vector.broadcast %c0_i32_147 : i32 to vector<16x128xi32>
    %373 = arith.cmpi eq, %371, %372 : vector<16x128xi32>
    %c112_i32_148 = arith.constant 112 : i32
    %374 = tpu.dynamic_rotate %369 by %c112_i32_148 dim 1 : vector<16x128xf32>, i32 -> vector<16x128xf32>
    %c16_i32_149 = arith.constant 16 : i32
    %375 = tpu.dynamic_rotate %369 by %c16_i32_149 dim 1 : vector<16x128xf32>, i32 -> vector<16x128xf32>
    %376 = arith.select %373, %374, %375 : vector<16x128xi1>, vector<16x128xf32>
    %c128_i32_150 = arith.constant 128 : i32
    %377 = vector.broadcast %c128_i32_150 : i32 to vector<16x128xi32>
    %378 = arith.andi %1, %377 : vector<16x128xi32>
    %c0_i32_151 = arith.constant 0 : i32
    %379 = vector.broadcast %c0_i32_151 : i32 to vector<16x128xi32>
    %380 = arith.cmpi eq, %378, %379 : vector<16x128xi32>
    %381 = arith.xori %373, %380 : vector<16x128xi1>
    %cst_152 = arith.constant dense<true> : vector<16x128xi1>
    %382 = arith.xori %381, %cst_152 : vector<16x128xi1>
    %383 = arith.minimumf %369, %376 : vector<16x128xf32>
    %384 = arith.maximumf %369, %376 : vector<16x128xf32>
    %385 = arith.select %382, %383, %384 : vector<16x128xi1>, vector<16x128xf32>
    %c8_i32_153 = arith.constant 8 : i32
    %386 = vector.broadcast %c8_i32_153 : i32 to vector<16x128xi32>
    %387 = arith.andi %1, %386 : vector<16x128xi32>
    %c0_i32_154 = arith.constant 0 : i32
    %388 = vector.broadcast %c0_i32_154 : i32 to vector<16x128xi32>
    %389 = arith.cmpi eq, %387, %388 : vector<16x128xi32>
    %c120_i32_155 = arith.constant 120 : i32
    %390 = tpu.dynamic_rotate %385 by %c120_i32_155 dim 1 : vector<16x128xf32>, i32 -> vector<16x128xf32>
    %c8_i32_156 = arith.constant 8 : i32
    %391 = tpu.dynamic_rotate %385 by %c8_i32_156 dim 1 : vector<16x128xf32>, i32 -> vector<16x128xf32>
    %392 = arith.select %389, %390, %391 : vector<16x128xi1>, vector<16x128xf32>
    %c128_i32_157 = arith.constant 128 : i32
    %393 = vector.broadcast %c128_i32_157 : i32 to vector<16x128xi32>
    %394 = arith.andi %1, %393 : vector<16x128xi32>
    %c0_i32_158 = arith.constant 0 : i32
    %395 = vector.broadcast %c0_i32_158 : i32 to vector<16x128xi32>
    %396 = arith.cmpi eq, %394, %395 : vector<16x128xi32>
    %397 = arith.xori %389, %396 : vector<16x128xi1>
    %cst_159 = arith.constant dense<true> : vector<16x128xi1>
    %398 = arith.xori %397, %cst_159 : vector<16x128xi1>
    %399 = arith.minimumf %385, %392 : vector<16x128xf32>
    %400 = arith.maximumf %385, %392 : vector<16x128xf32>
    %401 = arith.select %398, %399, %400 : vector<16x128xi1>, vector<16x128xf32>
    %c4_i32_160 = arith.constant 4 : i32
    %402 = vector.broadcast %c4_i32_160 : i32 to vector<16x128xi32>
    %403 = arith.andi %1, %402 : vector<16x128xi32>
    %c0_i32_161 = arith.constant 0 : i32
    %404 = vector.broadcast %c0_i32_161 : i32 to vector<16x128xi32>
    %405 = arith.cmpi eq, %403, %404 : vector<16x128xi32>
    %c124_i32_162 = arith.constant 124 : i32
    %406 = tpu.dynamic_rotate %401 by %c124_i32_162 dim 1 : vector<16x128xf32>, i32 -> vector<16x128xf32>
    %c4_i32_163 = arith.constant 4 : i32
    %407 = tpu.dynamic_rotate %401 by %c4_i32_163 dim 1 : vector<16x128xf32>, i32 -> vector<16x128xf32>
    %408 = arith.select %405, %406, %407 : vector<16x128xi1>, vector<16x128xf32>
    %c128_i32_164 = arith.constant 128 : i32
    %409 = vector.broadcast %c128_i32_164 : i32 to vector<16x128xi32>
    %410 = arith.andi %1, %409 : vector<16x128xi32>
    %c0_i32_165 = arith.constant 0 : i32
    %411 = vector.broadcast %c0_i32_165 : i32 to vector<16x128xi32>
    %412 = arith.cmpi eq, %410, %411 : vector<16x128xi32>
    %413 = arith.xori %405, %412 : vector<16x128xi1>
    %cst_166 = arith.constant dense<true> : vector<16x128xi1>
    %414 = arith.xori %413, %cst_166 : vector<16x128xi1>
    %415 = arith.minimumf %401, %408 : vector<16x128xf32>
    %416 = arith.maximumf %401, %408 : vector<16x128xf32>
    %417 = arith.select %414, %415, %416 : vector<16x128xi1>, vector<16x128xf32>
    %c2_i32_167 = arith.constant 2 : i32
    %418 = vector.broadcast %c2_i32_167 : i32 to vector<16x128xi32>
    %419 = arith.andi %1, %418 : vector<16x128xi32>
    %c0_i32_168 = arith.constant 0 : i32
    %420 = vector.broadcast %c0_i32_168 : i32 to vector<16x128xi32>
    %421 = arith.cmpi eq, %419, %420 : vector<16x128xi32>
    %c126_i32_169 = arith.constant 126 : i32
    %422 = tpu.dynamic_rotate %417 by %c126_i32_169 dim 1 : vector<16x128xf32>, i32 -> vector<16x128xf32>
    %c2_i32_170 = arith.constant 2 : i32
    %423 = tpu.dynamic_rotate %417 by %c2_i32_170 dim 1 : vector<16x128xf32>, i32 -> vector<16x128xf32>
    %424 = arith.select %421, %422, %423 : vector<16x128xi1>, vector<16x128xf32>
    %c128_i32_171 = arith.constant 128 : i32
    %425 = vector.broadcast %c128_i32_171 : i32 to vector<16x128xi32>
    %426 = arith.andi %1, %425 : vector<16x128xi32>
    %c0_i32_172 = arith.constant 0 : i32
    %427 = vector.broadcast %c0_i32_172 : i32 to vector<16x128xi32>
    %428 = arith.cmpi eq, %426, %427 : vector<16x128xi32>
    %429 = arith.xori %421, %428 : vector<16x128xi1>
    %cst_173 = arith.constant dense<true> : vector<16x128xi1>
    %430 = arith.xori %429, %cst_173 : vector<16x128xi1>
    %431 = arith.minimumf %417, %424 : vector<16x128xf32>
    %432 = arith.maximumf %417, %424 : vector<16x128xf32>
    %433 = arith.select %430, %431, %432 : vector<16x128xi1>, vector<16x128xf32>
    %c1_i32_174 = arith.constant 1 : i32
    %434 = vector.broadcast %c1_i32_174 : i32 to vector<16x128xi32>
    %435 = arith.andi %1, %434 : vector<16x128xi32>
    %c0_i32_175 = arith.constant 0 : i32
    %436 = vector.broadcast %c0_i32_175 : i32 to vector<16x128xi32>
    %437 = arith.cmpi eq, %435, %436 : vector<16x128xi32>
    %c127_i32_176 = arith.constant 127 : i32
    %438 = tpu.dynamic_rotate %433 by %c127_i32_176 dim 1 : vector<16x128xf32>, i32 -> vector<16x128xf32>
    %c1_i32_177 = arith.constant 1 : i32
    %439 = tpu.dynamic_rotate %433 by %c1_i32_177 dim 1 : vector<16x128xf32>, i32 -> vector<16x128xf32>
    %440 = arith.select %437, %438, %439 : vector<16x128xi1>, vector<16x128xf32>
    %c128_i32_178 = arith.constant 128 : i32
    %441 = vector.broadcast %c128_i32_178 : i32 to vector<16x128xi32>
    %442 = arith.andi %1, %441 : vector<16x128xi32>
    %c0_i32_179 = arith.constant 0 : i32
    %443 = vector.broadcast %c0_i32_179 : i32 to vector<16x128xi32>
    %444 = arith.cmpi eq, %442, %443 : vector<16x128xi32>
    %445 = arith.xori %437, %444 : vector<16x128xi1>
    %cst_180 = arith.constant dense<true> : vector<16x128xi1>
    %446 = arith.xori %445, %cst_180 : vector<16x128xi1>
    %447 = arith.minimumf %433, %440 : vector<16x128xf32>
    %448 = arith.maximumf %433, %440 : vector<16x128xf32>
    %449 = arith.select %446, %447, %448 : vector<16x128xi1>, vector<16x128xf32>
    %450 = vector.extract_strided_slice %449 {offsets = [0, 0], sizes = [8, 128], strides = [1, 1]} : vector<16x128xf32> to vector<8x128xf32>
    %451 = vector.extract_strided_slice %449 {offsets = [8, 0], sizes = [8, 128], strides = [1, 1]} : vector<16x128xf32> to vector<8x128xf32>
    %452 = arith.subf %450, %451 : vector<8x128xf32>
    %453 = math.absf %452 : vector<8x128xf32>
    %454 = math.absf %451 : vector<8x128xf32>
    %455 = tpu.reciprocal %454 : vector<8x128xf32> -> vector<8x128xf32>
    %456 = arith.mulf %453, %455 : vector<8x128xf32>
    %457 = tpu.iota {dimensions = array<i32: 1>} : vector<8x128xi32>
    %c16_i32_181 = arith.constant 16 : i32
    %458 = vector.broadcast %c16_i32_181 : i32 to vector<8x128xi32>
    %459 = arith.cmpi slt, %457, %458 : vector<8x128xi32>
    %cst_182 = arith.constant 0.000000e+00 : f32
    %460 = vector.broadcast %cst_182 : f32 to vector<8x128xf32>
    %461 = arith.select %459, %456, %460 : vector<8x128xi1>, vector<8x128xf32>
    %cst_183 = arith.constant dense<0.000000e+00> : vector<8xf32>
    %462 = vector.multi_reduction <add>, %461, %cst_183 [1] : vector<8x128xf32> to vector<8xf32>
    %463 = vector.shape_cast %462 : vector<8xf32> to vector<8x1xf32>
    %cst_184 = arith.constant dense<0.000000e+00> : vector<1xf32>
    %464 = vector.multi_reduction <add>, %463, %cst_184 [0] : vector<8x1xf32> to vector<1xf32>
    %465 = vector.shape_cast %464 : vector<1xf32> to vector<1x1xf32>
    %cst_185 = arith.constant 7.812500e-03 : f32
    %466 = vector.broadcast %cst_185 : f32 to vector<1x1xf32>
    %467 = arith.mulf %465, %466 : vector<1x1xf32>
    %c0_186 = arith.constant 0 : index
    %c0_187 = arith.constant 0 : index
    %468 = vector.load %arg1[%c0_186, %c0_187] : memref<1x1xf32, #tpu.memory_space<vmem>>, vector<1x1xf32>
    tpu.vector_store %arg1[%c0_186, %c0_187], %467 {strides = array<i32>} : memref<1x1xf32, #tpu.memory_space<vmem>>, vector<1x1xf32>,
    return
  }
}

</mosaic_0001>

<bundles_post_ra>
// kernel: tpu_custom_call.1
= control target key start
LH: loop header
LB: loop body
LE: loop exit
PB: predicated region body
PF: predicated region fallthrough
CT: control target
= control target key end

     0   :  { %6 = vsyncpa [#allocation3], 0  ;;  %s1080_s0 = inlined_call_operand.hbm [shape: f32[16,128], index: 0, kind: input, shape index: {}]   ;;  %s1081_s1 = inlined_call_operand.hbm [shape: f32[1,1], index: 1, kind: output, shape index: {}]  }
   0x1   :  { %7 = vsyncpa [#allocation4], 0  ;;  %s641_s6 = smov [#allocation2]   ;;  %s593_s10 = scalar_lea.hbm %s1080_s0, 256 }
   0x2   :  { %s13_s7 = sshll.u32 %s641_s6, 4  ;;  %p594_p0 = scmp.ne.s32.totalorder %s1080_s0, %s593_s10  ;;  %s14_s7 = int_to_ptr.vmem [resolvable:$true] %s13_s7 }
   0x3   :  { %p597_p1 = scmp.lt.u32.totalorder %s593_s10, %s1080_s0 }
   0x5   :  { %p599_p2 = pnand %p597_p1, %p594_p0 }
   0x7   :  { %602 = shalt.err (!%p599_p2)
}
   0x8   :  { %s603_s15 = scalar_lea.vmem %s14_s7, 256  ;;  %p608_p4 = scmp.lt.s32.totalorder %s14_s7, %s14_s7 }
   0x9   :  { %p604_p3 = scmp.ne.s32.totalorder %s14_s7, %s603_s15  ;;  %p609_p5 = scmp.lt.s32.totalorder %s603_s15, %s603_s15 }
   0xb   :  { %p610_p6 = por %p609_p5, %p608_p4 }
   0xd   :  { %p611_p7 = pnand %p610_p6, %p604_p3 }
   0xf   :  { %614 = shalt.err (!%p611_p7)
}
  0x10   :  { %s642_s16 = smov 128   ;;  %s643_s17 = smov 8  }
  0x11   :  { %19 = dma.hbm_to_vmem [thread:$0]  %s1080_s0, 256, %s14_s7, [#allocation3], %s642_s16, %s642_s16, %s643_s17  }
  0x12   :  { %637 = dma.done.wait [#allocation3], 256  }
  0x13   :  { %638 = vsyncadd [#allocation3], 4294967040  ;;  %v24_v0 = vld [vmem:[#allocation2 + $0x8] sm:$0xff]  ;;  %v23_v1 = vld [vmem:[#allocation2] sm:$0xff]  ;;  %s644_s20 = smov 127   ;;  %s645_s21 = smov 1   ;;  %v25_v2 = vlaneseq }
  0x14   :  { %31 = vrot.lane.b32.xlu0 %v24_v0, %s644_s20  ;;  %29 = vrot.lane.b32.xlu1 %v23_v1, %s644_s20  ;;  %vm646_vm3 = vmmov 1   ;;  %s647_s0 = smov 126   ;;  %s648_s22 = smov 2  }
  0x15   :  { %v685_v3 = vand.u32 127, %v25_v2  ;;  %s649_s23 = smov 4   ;;  %s650_s24 = smov 124  }
  0x16   :  { %s651_s25 = smov 120   ;;  %s652_s26 = smov 16  }
  0x17   :  { %v27_v4 = vand.u32 1, %v685_v3  ;;  %v39_v5 = vand.u32 2, %v685_v3  ;;  %v59_v20 = vand.u32 4, %v685_v3  ;;  %v97_v46 = vand.u32 8, %v685_v3  ;;  %s653_s27 = smov 112   ;;  %s654_s28 = smov 32  }
  0x18   :  { %35 = vrot.lane.b32.xlu0 %v24_v0, %s645_s21  ;;  %33 = vrot.lane.b32.xlu1 %v23_v1, %s645_s21  ;;  %s655_s29 = smov 96   ;;  %s656_s30 = smov 64  }
  0x19   :  { %vm689_vm0 = vcmp.eq.s32.totalorder %v27_v4, 0  ;;  %vm693_vm1 = vcmp.eq.s32.totalorder %v39_v5, 0  ;;  %vm711_vm5 = vcmp.eq.s32.totalorder %v59_v20, 0  ;;  %vm742_vm10 = vcmp.eq.s32.totalorder %v97_v46, 0  ;;  %s657_s2 = smov [#allocation5]  }
  0x1a   :  { %vm41_vm2 = vmxor %vm689_vm0, %vm693_vm1  ;;  %s565_s3 = sshll.u32 %s657_s2, 4  ;;  %s566_s3 = int_to_ptr.vmem [resolvable:$true] %s565_s3 }
  0x1b   :  { %vm42_vm4 = vmxor %vm41_vm2, %vm646_vm3  ;;  %s615_s4 = scalar_lea.vmem %s566_s3, 16  ;;  %s619_s5 = scalar_lea.vmem %s566_s3, 32 }
  0x1c   :  { %vm61_vm6 = vmxor %vm693_vm1, %vm711_vm5  ;;  %p616_p8 = scmp.ne.s32.totalorder %s566_s3, %s615_s4  ;;  %p620_p9 = scmp.lt.s32.totalorder %s566_s3, %s566_s3 }
  0x1d   :  { %vm62_vm7 = vmxor %vm61_vm6, %vm646_vm3  ;;  %p621_p10 = scmp.lt.s32.totalorder %s619_s5, %s615_s4 }
  0x1e   :  { %vm79_vm8 = vmxor %vm689_vm0, %vm711_vm5 }
  0x1f   :  { %vm80_vm9 = vmxor %vm79_vm8, %vm646_vm3  ;;  %p622_p11 = por %p621_p10, %p620_p9 }
  0x20   :  { %vm99_vm11 = vmxor %vm711_vm5, %vm742_vm10 }
  0x21   :  { %vm100_vm12 = vmxor %vm99_vm11, %vm646_vm3  ;;  %p623_p12 = pnand %p622_p11, %p616_p8 }
  0x22   :  { %vm117_vm13 = vmxor %vm693_vm1, %vm742_vm10 }
  0x23   :  { %vm118_vm14 = vmxor %vm117_vm13, %vm646_vm3 }
  0x24   :  { %vm135_vm15 = vmxor %vm689_vm0, %vm742_vm10 }
  0x25   :  { %vm136_vm2 = vmxor %vm135_vm15, %vm646_vm3 }
  0x86   :  { %v32_v8 = vpop.permute.xlu0 %31  ;;  %v30_v9 = vpop.permute.xlu1 %29 }
  0x8a   :  { %v36_v10 = vpop.permute.xlu0 %35  ;;  %v34_v11 = vpop.permute.xlu1 %33 }
  0x8b   :  { %v38_v12 = vsel %vm689_vm0, %v32_v8, %v36_v10  ;;  %v37_v13 = vsel %vm689_vm0, %v30_v9, %v34_v11 }
  0x8c   :  { %v44_v14 = vmin.f32 %v24_v0, %v38_v12  ;;  %v46_v15 = vmax.f32 %v24_v0, %v38_v12  ;;  %v43_v16 = vmin.f32 %v23_v1, %v37_v13  ;;  %v45_v17 = vmax.f32 %v23_v1, %v37_v13 }
  0x8e   :  { %v48_v18 = vsel %vm42_vm4, %v44_v14, %v46_v15  ;;  %v47_v19 = vsel %vm42_vm4, %v43_v16, %v45_v17 }
  0x8f   :  { %51 = vrot.lane.b32.xlu0 %v48_v18, %s647_s0  ;;  %55 = vrot.lane.b32.xlu1 %v48_v18, %s648_s22 }
  0x93   :  { %53 = vrot.lane.b32.xlu1 %v47_v19, %s648_s22  ;;  %49 = vrot.lane.b32.xlu0 %v47_v19, %s647_s0 }
 0x101   :  { %v52_v22 = vpop.permute.xlu0 %51  ;;  %v56_v23 = vpop.permute.xlu1 %55 }
 0x102   :  { %v58_v24 = vsel %vm693_vm1, %v52_v22, %v56_v23 }
 0x103   :  { %v64_v25 = vmin.f32 %v48_v18, %v58_v24  ;;  %v66_v26 = vmax.f32 %v48_v18, %v58_v24  ;;  %v153_v24 = vand.u32 16, %v685_v3 }
 0x105   :  { %v50_v27 = vpop.permute.xlu0 %49  ;;  %v54_v28 = vpop.permute.xlu1 %53  ;;  %v68_v29 = vsel %vm62_vm7, %v64_v25, %v66_v26  ;;  %vm786_vm4 = vcmp.eq.s32.totalorder %v153_v24, 0 }
 0x106   :  { %v57_v30 = vsel %vm693_vm1, %v50_v27, %v54_v28  ;;  %75 = vrot.lane.b32.xlu1 %v68_v29, %s645_s21  ;;  %71 = vrot.lane.b32.xlu0 %v68_v29, %s644_s20  ;;  %vm155_vm6 = vmxor %vm742_vm10, %vm786_vm4 }
 0x107   :  { %v63_v31 = vmin.f32 %v47_v19, %v57_v30  ;;  %v65_v32 = vmax.f32 %v47_v19, %v57_v30  ;;  %vm173_vm8 = vmxor %vm711_vm5, %vm786_vm4 }
 0x108   :  { %vm191_vm11 = vmxor %vm693_vm1, %vm786_vm4 }
 0x109   :  { %v67_v33 = vsel %vm62_vm7, %v63_v31, %v65_v32  ;;  %vm156_vm7 = vmxor %vm155_vm6, %vm646_vm3 }
 0x10a   :  { %73 = vrot.lane.b32.xlu1 %v67_v33, %s645_s21  ;;  %69 = vrot.lane.b32.xlu0 %v67_v33, %s644_s20  ;;  %vm209_vm13 = vmxor %vm689_vm0, %vm786_vm4 }
 0x178   :  { %v72_v34 = vpop.permute.xlu0 %71  ;;  %v76_v35 = vpop.permute.xlu1 %75 }
 0x179   :  { %v78_v36 = vsel %vm689_vm0, %v72_v34, %v76_v35 }
 0x17a   :  { %v82_v37 = vmin.f32 %v68_v29, %v78_v36  ;;  %v84_v38 = vmax.f32 %v68_v29, %v78_v36 }
 0x17c   :  { %v70_v39 = vpop.permute.xlu0 %69  ;;  %v74_v40 = vpop.permute.xlu1 %73  ;;  %v86_v41 = vsel %vm80_vm9, %v82_v37, %v84_v38 }
 0x17d   :  { %v77_v42 = vsel %vm689_vm0, %v70_v39, %v74_v40  ;;  %93 = vrot.lane.b32.xlu1 %v86_v41, %s649_s23  ;;  %89 = vrot.lane.b32.xlu0 %v86_v41, %s650_s24 }
 0x17e   :  { %v81_v43 = vmin.f32 %v67_v33, %v77_v42  ;;  %v83_v44 = vmax.f32 %v67_v33, %v77_v42 }
 0x180   :  { %v85_v45 = vsel %vm80_vm9, %v81_v43, %v83_v44  ;;  %vm174_vm9 = vmxor %vm173_vm8, %vm646_vm3 }
 0x181   :  { %91 = vrot.lane.b32.xlu1 %v85_v45, %s649_s23  ;;  %87 = vrot.lane.b32.xlu0 %v85_v45, %s650_s24 }
 0x1ef   :  { %v90_v48 = vpop.permute.xlu0 %89  ;;  %v94_v49 = vpop.permute.xlu1 %93 }
 0x1f0   :  { %v96_v50 = vsel %vm711_vm5, %v90_v48, %v94_v49 }
 0x1f1   :  { %v102_v51 = vmin.f32 %v86_v41, %v96_v50  ;;  %v104_v52 = vmax.f32 %v86_v41, %v96_v50 }
 0x1f3   :  { %v88_v53 = vpop.permute.xlu0 %87  ;;  %v92_v54 = vpop.permute.xlu1 %91  ;;  %v106_v55 = vsel %vm100_vm12, %v102_v51, %v104_v52 }
 0x1f4   :  { %v95_v56 = vsel %vm711_vm5, %v88_v53, %v92_v54  ;;  %113 = vrot.lane.b32.xlu1 %v106_v55, %s648_s22  ;;  %109 = vrot.lane.b32.xlu0 %v106_v55, %s647_s0 }
 0x1f5   :  { %v101_v57 = vmin.f32 %v85_v45, %v95_v56  ;;  %v103_v58 = vmax.f32 %v85_v45, %v95_v56 }
 0x1f7   :  { %v105_v59 = vsel %vm100_vm12, %v101_v57, %v103_v58  ;;  %vm192_vm12 = vmxor %vm191_vm11, %vm646_vm3 }
 0x1f8   :  { %111 = vrot.lane.b32.xlu1 %v105_v59, %s648_s22  ;;  %107 = vrot.lane.b32.xlu0 %v105_v59, %s647_s0 }
 0x266   :  { %v110_v60 = vpop.permute.xlu0 %109  ;;  %v114_v61 = vpop.permute.xlu1 %113 }
 0x267   :  { %v116_v62 = vsel %vm693_vm1, %v110_v60, %v114_v61 }
 0x268   :  { %v120_v63 = vmin.f32 %v106_v55, %v116_v62  ;;  %v122_v0 = vmax.f32 %v106_v55, %v116_v62 }
 0x26a   :  { %v108_v1 = vpop.permute.xlu0 %107  ;;  %v112_v2 = vpop.permute.xlu1 %111  ;;  %v124_v4 = vsel %vm118_vm14, %v120_v63, %v122_v0 }
 0x26b   :  { %v115_v5 = vsel %vm693_vm1, %v108_v1, %v112_v2  ;;  %131 = vrot.lane.b32.xlu1 %v124_v4, %s645_s21  ;;  %127 = vrot.lane.b32.xlu0 %v124_v4, %s644_s20 }
 0x26c   :  { %v119_v8 = vmin.f32 %v105_v59, %v115_v5  ;;  %v121_v9 = vmax.f32 %v105_v59, %v115_v5 }
 0x26e   :  { %v123_v10 = vsel %vm118_vm14, %v119_v8, %v121_v9  ;;  %vm210_vm14 = vmxor %vm209_vm13, %vm646_vm3 }
 0x26f   :  { %129 = vrot.lane.b32.xlu1 %v123_v10, %s645_s21  ;;  %125 = vrot.lane.b32.xlu0 %v123_v10, %s644_s20 }
 0x2dd   :  { %v128_v11 = vpop.permute.xlu0 %127  ;;  %v132_v12 = vpop.permute.xlu1 %131 }
 0x2de   :  { %v134_v13 = vsel %vm689_vm0, %v128_v11, %v132_v12 }
 0x2df   :  { %v138_v14 = vmin.f32 %v124_v4, %v134_v13  ;;  %v140_v15 = vmax.f32 %v124_v4, %v134_v13 }
 0x2e1   :  { %v126_v16 = vpop.permute.xlu0 %125  ;;  %v130_v17 = vpop.permute.xlu1 %129  ;;  %v142_v18 = vsel %vm136_vm2, %v138_v14, %v140_v15  ;;  %v227_v14 = vand.u32 32, %v685_v3 }
 0x2e2   :  { %v133_v19 = vsel %vm689_vm0, %v126_v16, %v130_v17  ;;  %149 = vrot.lane.b32.xlu1 %v142_v18, %s643_s17  ;;  %145 = vrot.lane.b32.xlu0 %v142_v18, %s651_s25 }
 0x2e3   :  { %v137_v20 = vmin.f32 %v123_v10, %v133_v19  ;;  %v139_v22 = vmax.f32 %v123_v10, %v133_v19  ;;  %vm843_vm15 = vcmp.eq.s32.totalorder %v227_v14, 0 }
 0x2e5   :  { %v141_v23 = vsel %vm136_vm2, %v137_v20, %v139_v22  ;;  %vm229_vm2 = vmxor %vm786_vm4, %vm843_vm15 }
 0x2e6   :  { %147 = vrot.lane.b32.xlu1 %v141_v23, %s643_s17  ;;  %143 = vrot.lane.b32.xlu0 %v141_v23, %s651_s25  ;;  %vm230_vm6 = vmxor %vm229_vm2, %vm646_vm3 }
 0x354   :  { %v146_v26 = vpop.permute.xlu0 %145  ;;  %v150_v27 = vpop.permute.xlu1 %149 }
 0x355   :  { %v152_v28 = vsel %vm742_vm10, %v146_v26, %v150_v27 }
 0x356   :  { %v158_v29 = vmin.f32 %v142_v18, %v152_v28  ;;  %v160_v30 = vmax.f32 %v142_v18, %v152_v28 }
 0x358   :  { %v144_v31 = vpop.permute.xlu0 %143  ;;  %v148_v32 = vpop.permute.xlu1 %147  ;;  %v162_v33 = vsel %vm156_vm7, %v158_v29, %v160_v30 }
 0x359   :  { %v151_v34 = vsel %vm742_vm10, %v144_v31, %v148_v32  ;;  %169 = vrot.lane.b32.xlu1 %v162_v33, %s649_s23  ;;  %165 = vrot.lane.b32.xlu0 %v162_v33, %s650_s24 }
 0x35a   :  { %v157_v35 = vmin.f32 %v141_v23, %v151_v34  ;;  %v159_v36 = vmax.f32 %v141_v23, %v151_v34 }
 0x35c   :  { %v161_v37 = vsel %vm156_vm7, %v157_v35, %v159_v36  ;;  %vm247_vm7 = vmxor %vm742_vm10, %vm843_vm15 }
 0x35d   :  { %167 = vrot.lane.b32.xlu1 %v161_v37, %s649_s23  ;;  %163 = vrot.lane.b32.xlu0 %v161_v37, %s650_s24  ;;  %vm248_vm8 = vmxor %vm247_vm7, %vm646_vm3 }
 0x3cb   :  { %v166_v38 = vpop.permute.xlu0 %165  ;;  %v170_v39 = vpop.permute.xlu1 %169 }
 0x3cc   :  { %v172_v40 = vsel %vm711_vm5, %v166_v38, %v170_v39 }
 0x3cd   :  { %v176_v41 = vmin.f32 %v162_v33, %v172_v40  ;;  %v178_v42 = vmax.f32 %v162_v33, %v172_v40 }
 0x3cf   :  { %v164_v43 = vpop.permute.xlu0 %163  ;;  %v168_v44 = vpop.permute.xlu1 %167  ;;  %v180_v45 = vsel %vm174_vm9, %v176_v41, %v178_v42 }
 0x3d0   :  { %v171_v46 = vsel %vm711_vm5, %v164_v43, %v168_v44  ;;  %187 = vrot.lane.b32.xlu1 %v180_v45, %s648_s22  ;;  %183 = vrot.lane.b32.xlu0 %v180_v45, %s647_s0 }
 0x3d1   :  { %v175_v48 = vmin.f32 %v161_v37, %v171_v46  ;;  %v177_v49 = vmax.f32 %v161_v37, %v171_v46 }
 0x3d3   :  { %v179_v50 = vsel %vm174_vm9, %v175_v48, %v177_v49  ;;  %vm265_vm9 = vmxor %vm711_vm5, %vm843_vm15 }
 0x3d4   :  { %185 = vrot.lane.b32.xlu1 %v179_v50, %s648_s22  ;;  %181 = vrot.lane.b32.xlu0 %v179_v50, %s647_s0  ;;  %vm266_vm11 = vmxor %vm265_vm9, %vm646_vm3 }
 0x442   :  { %v184_v51 = vpop.permute.xlu0 %183  ;;  %v188_v52 = vpop.permute.xlu1 %187 }
 0x443   :  { %v190_v53 = vsel %vm693_vm1, %v184_v51, %v188_v52 }
 0x444   :  { %v194_v54 = vmin.f32 %v180_v45, %v190_v53  ;;  %v196_v55 = vmax.f32 %v180_v45, %v190_v53 }
 0x446   :  { %v182_v56 = vpop.permute.xlu0 %181  ;;  %v186_v57 = vpop.permute.xlu1 %185  ;;  %v198_v58 = vsel %vm192_vm12, %v194_v54, %v196_v55 }
 0x447   :  { %v189_v59 = vsel %vm693_vm1, %v182_v56, %v186_v57  ;;  %205 = vrot.lane.b32.xlu1 %v198_v58, %s645_s21  ;;  %201 = vrot.lane.b32.xlu0 %v198_v58, %s644_s20 }
 0x448   :  { %v193_v60 = vmin.f32 %v179_v50, %v189_v59  ;;  %v195_v61 = vmax.f32 %v179_v50, %v189_v59 }
 0x44a   :  { %v197_v62 = vsel %vm192_vm12, %v193_v60, %v195_v61  ;;  %vm283_vm12 = vmxor %vm693_vm1, %vm843_vm15 }
 0x44b   :  { %203 = vrot.lane.b32.xlu1 %v197_v62, %s645_s21  ;;  %199 = vrot.lane.b32.xlu0 %v197_v62, %s644_s20  ;;  %vm284_vm13 = vmxor %vm283_vm12, %vm646_vm3 }
 0x4b9   :  { %v202_v63 = vpop.permute.xlu0 %201  ;;  %v206_v0 = vpop.permute.xlu1 %205 }
 0x4ba   :  { %v208_v1 = vsel %vm689_vm0, %v202_v63, %v206_v0 }
 0x4bb   :  { %v212_v2 = vmin.f32 %v198_v58, %v208_v1  ;;  %v214_v4 = vmax.f32 %v198_v58, %v208_v1 }
 0x4bd   :  { %v200_v5 = vpop.permute.xlu0 %199  ;;  %v204_v8 = vpop.permute.xlu1 %203  ;;  %v216_v9 = vsel %vm210_vm14, %v212_v2, %v214_v4 }
 0x4be   :  { %v207_v10 = vsel %vm689_vm0, %v200_v5, %v204_v8  ;;  %223 = vrot.lane.b32.xlu1 %v216_v9, %s652_s26  ;;  %219 = vrot.lane.b32.xlu0 %v216_v9, %s653_s27 }
 0x4bf   :  { %v211_v11 = vmin.f32 %v197_v62, %v207_v10  ;;  %v213_v12 = vmax.f32 %v197_v62, %v207_v10 }
 0x4c1   :  { %v215_v13 = vsel %vm210_vm14, %v211_v11, %v213_v12  ;;  %vm301_vm14 = vmxor %vm689_vm0, %vm843_vm15 }
 0x4c2   :  { %221 = vrot.lane.b32.xlu1 %v215_v13, %s652_s26  ;;  %217 = vrot.lane.b32.xlu0 %v215_v13, %s653_s27  ;;  %vm302_vm2 = vmxor %vm301_vm14, %vm646_vm3 }
 0x530   :  { %v220_v16 = vpop.permute.xlu0 %219  ;;  %v224_v17 = vpop.permute.xlu1 %223 }
 0x531   :  { %v226_v18 = vsel %vm786_vm4, %v220_v16, %v224_v17 }
 0x532   :  { %v232_v19 = vmin.f32 %v216_v9, %v226_v18  ;;  %v234_v20 = vmax.f32 %v216_v9, %v226_v18 }
 0x534   :  { %v218_v22 = vpop.permute.xlu0 %217  ;;  %v222_v23 = vpop.permute.xlu1 %221  ;;  %v236_v24 = vsel %vm230_vm6, %v232_v19, %v234_v20  ;;  %v319_v19 = vand.u32 64, %v685_v3 }
 0x535   :  { %v225_v26 = vsel %vm786_vm4, %v218_v22, %v222_v23  ;;  %243 = vrot.lane.b32.xlu1 %v236_v24, %s643_s17  ;;  %239 = vrot.lane.b32.xlu0 %v236_v24, %s651_s25 }
 0x536   :  { %v231_v27 = vmin.f32 %v215_v13, %v225_v26  ;;  %v233_v28 = vmax.f32 %v215_v13, %v225_v26 }
 0x538   :  { %v235_v29 = vsel %vm230_vm6, %v231_v27, %v233_v28  ;;  %vm913_vm6 = vcmp.eq.s32.totalorder %v319_v19, 0 }
 0x539   :  { %241 = vrot.lane.b32.xlu1 %v235_v29, %s643_s17  ;;  %237 = vrot.lane.b32.xlu0 %v235_v29, %s651_s25  ;;  %vm321_vm7 = vmxor %vm843_vm15, %vm913_vm6 }
 0x53a   :  { %vm339_vm9 = vmxor %vm786_vm4, %vm913_vm6 }
 0x53b   :  { %vm357_vm12 = vmxor %vm742_vm10, %vm913_vm6 }
 0x53c   :  { %vm375_vm14 = vmxor %vm711_vm5, %vm913_vm6 }
 0x5a7   :  { %v240_v30 = vpop.permute.xlu0 %239  ;;  %v244_v31 = vpop.permute.xlu1 %243 }
 0x5a8   :  { %v246_v32 = vsel %vm742_vm10, %v240_v30, %v244_v31 }
 0x5a9   :  { %v250_v33 = vmin.f32 %v236_v24, %v246_v32  ;;  %v252_v34 = vmax.f32 %v236_v24, %v246_v32 }
 0x5ab   :  { %v238_v35 = vpop.permute.xlu0 %237  ;;  %v242_v36 = vpop.permute.xlu1 %241  ;;  %v254_v37 = vsel %vm248_vm8, %v250_v33, %v252_v34 }
 0x5ac   :  { %v245_v38 = vsel %vm742_vm10, %v238_v35, %v242_v36  ;;  %261 = vrot.lane.b32.xlu1 %v254_v37, %s649_s23  ;;  %257 = vrot.lane.b32.xlu0 %v254_v37, %s650_s24 }
 0x5ad   :  { %v249_v39 = vmin.f32 %v235_v29, %v245_v38  ;;  %v251_v40 = vmax.f32 %v235_v29, %v245_v38 }
 0x5af   :  { %v253_v41 = vsel %vm248_vm8, %v249_v39, %v251_v40  ;;  %vm322_vm8 = vmxor %vm321_vm7, %vm646_vm3 }
 0x5b0   :  { %259 = vrot.lane.b32.xlu1 %v253_v41, %s649_s23  ;;  %255 = vrot.lane.b32.xlu0 %v253_v41, %s650_s24  ;;  %vm393_vm7 = vmxor %vm693_vm1, %vm913_vm6 }
 0x61e   :  { %v258_v42 = vpop.permute.xlu0 %257  ;;  %v262_v43 = vpop.permute.xlu1 %261 }
 0x61f   :  { %v264_v44 = vsel %vm711_vm5, %v258_v42, %v262_v43 }
 0x620   :  { %v268_v45 = vmin.f32 %v254_v37, %v264_v44  ;;  %v270_v46 = vmax.f32 %v254_v37, %v264_v44 }
 0x622   :  { %v256_v48 = vpop.permute.xlu0 %255  ;;  %v260_v49 = vpop.permute.xlu1 %259  ;;  %v272_v50 = vsel %vm266_vm11, %v268_v45, %v270_v46 }
 0x623   :  { %v263_v51 = vsel %vm711_vm5, %v256_v48, %v260_v49  ;;  %279 = vrot.lane.b32.xlu1 %v272_v50, %s648_s22  ;;  %275 = vrot.lane.b32.xlu0 %v272_v50, %s647_s0 }
 0x624   :  { %v267_v52 = vmin.f32 %v253_v41, %v263_v51  ;;  %v269_v53 = vmax.f32 %v253_v41, %v263_v51 }
 0x626   :  { %v271_v54 = vsel %vm266_vm11, %v267_v52, %v269_v53  ;;  %vm340_vm11 = vmxor %vm339_vm9, %vm646_vm3 }
 0x627   :  { %277 = vrot.lane.b32.xlu1 %v271_v54, %s648_s22  ;;  %273 = vrot.lane.b32.xlu0 %v271_v54, %s647_s0  ;;  %vm411_vm9 = vmxor %vm689_vm0, %vm913_vm6 }
 0x695   :  { %v276_v55 = vpop.permute.xlu0 %275  ;;  %v280_v56 = vpop.permute.xlu1 %279 }
 0x696   :  { %v282_v57 = vsel %vm693_vm1, %v276_v55, %v280_v56 }
 0x697   :  { %v286_v58 = vmin.f32 %v272_v50, %v282_v57  ;;  %v288_v59 = vmax.f32 %v272_v50, %v282_v57 }
 0x699   :  { %v274_v60 = vpop.permute.xlu0 %273  ;;  %v278_v61 = vpop.permute.xlu1 %277  ;;  %v290_v62 = vsel %vm284_vm13, %v286_v58, %v288_v59 }
 0x69a   :  { %v281_v63 = vsel %vm693_vm1, %v274_v60, %v278_v61  ;;  %297 = vrot.lane.b32.xlu1 %v290_v62, %s645_s21  ;;  %293 = vrot.lane.b32.xlu0 %v290_v62, %s644_s20 }
 0x69b   :  { %v285_v0 = vmin.f32 %v271_v54, %v281_v63  ;;  %v287_v1 = vmax.f32 %v271_v54, %v281_v63 }
 0x69d   :  { %v289_v2 = vsel %vm284_vm13, %v285_v0, %v287_v1  ;;  %vm358_vm13 = vmxor %vm357_vm12, %vm646_vm3 }
 0x69e   :  { %295 = vrot.lane.b32.xlu1 %v289_v2, %s645_s21  ;;  %291 = vrot.lane.b32.xlu0 %v289_v2, %s644_s20  ;;  %vm425_vm12 = vmxor %vm913_vm6, %vm646_vm3 }
 0x69f   :  { %vm443_vm6 = vmxor %vm843_vm15, %vm646_vm3 }
 0x70c   :  { %v294_v4 = vpop.permute.xlu0 %293  ;;  %v298_v5 = vpop.permute.xlu1 %297 }
 0x70d   :  { %v300_v8 = vsel %vm689_vm0, %v294_v4, %v298_v5 }
 0x70e   :  { %v304_v9 = vmin.f32 %v290_v62, %v300_v8  ;;  %v306_v10 = vmax.f32 %v290_v62, %v300_v8 }
 0x710   :  { %v292_v11 = vpop.permute.xlu0 %291  ;;  %v296_v12 = vpop.permute.xlu1 %295  ;;  %v308_v13 = vsel %vm302_vm2, %v304_v9, %v306_v10 }
 0x711   :  { %v299_v14 = vsel %vm689_vm0, %v292_v11, %v296_v12  ;;  %315 = vrot.lane.b32.xlu1 %v308_v13, %s654_s28  ;;  %311 = vrot.lane.b32.xlu0 %v308_v13, %s655_s29 }
 0x712   :  { %v303_v16 = vmin.f32 %v289_v2, %v299_v14  ;;  %v305_v17 = vmax.f32 %v289_v2, %v299_v14 }
 0x714   :  { %v307_v18 = vsel %vm302_vm2, %v303_v16, %v305_v17  ;;  %vm376_vm2 = vmxor %vm375_vm14, %vm646_vm3 }
 0x715   :  { %313 = vrot.lane.b32.xlu1 %v307_v18, %s654_s28  ;;  %309 = vrot.lane.b32.xlu0 %v307_v18, %s655_s29  ;;  %vm444_vm14 = vmxor %vm443_vm6, %vm646_vm3 }
 0x783   :  { %v312_v22 = vpop.permute.xlu0 %311  ;;  %v316_v23 = vpop.permute.xlu1 %315 }
 0x784   :  { %v318_v24 = vsel %vm843_vm15, %v312_v22, %v316_v23 }
 0x785   :  { %v324_v26 = vmin.f32 %v308_v13, %v318_v24  ;;  %v326_v27 = vmax.f32 %v308_v13, %v318_v24 }
 0x787   :  { %v310_v28 = vpop.permute.xlu0 %309  ;;  %v314_v29 = vpop.permute.xlu1 %313  ;;  %v328_v30 = vsel %vm322_vm8, %v324_v26, %v326_v27 }
 0x788   :  { %v317_v31 = vsel %vm843_vm15, %v310_v28, %v314_v29  ;;  %335 = vrot.lane.b32.xlu1 %v328_v30, %s652_s26  ;;  %331 = vrot.lane.b32.xlu0 %v328_v30, %s653_s27 }
 0x789   :  { %v323_v32 = vmin.f32 %v307_v18, %v317_v31  ;;  %v325_v33 = vmax.f32 %v307_v18, %v317_v31 }
 0x78b   :  { %v327_v34 = vsel %vm322_vm8, %v323_v32, %v325_v33  ;;  %vm394_vm8 = vmxor %vm393_vm7, %vm646_vm3 }
 0x78c   :  { %333 = vrot.lane.b32.xlu1 %v327_v34, %s652_s26  ;;  %329 = vrot.lane.b32.xlu0 %v327_v34, %s653_s27  ;;  %vm479_vm7 = vmxor %vm742_vm10, %vm646_vm3 }
 0x7fa   :  { %v332_v35 = vpop.permute.xlu0 %331  ;;  %v336_v36 = vpop.permute.xlu1 %335 }
 0x7fb   :  { %v338_v37 = vsel %vm786_vm4, %v332_v35, %v336_v36 }
 0x7fc   :  { %v342_v38 = vmin.f32 %v328_v30, %v338_v37  ;;  %v344_v39 = vmax.f32 %v328_v30, %v338_v37 }
 0x7fe   :  { %v330_v40 = vpop.permute.xlu0 %329  ;;  %v334_v41 = vpop.permute.xlu1 %333  ;;  %v346_v42 = vsel %vm340_vm11, %v342_v38, %v344_v39 }
 0x7ff   :  { %v337_v43 = vsel %vm786_vm4, %v330_v40, %v334_v41  ;;  %353 = vrot.lane.b32.xlu1 %v346_v42, %s643_s17  ;;  %349 = vrot.lane.b32.xlu0 %v346_v42, %s651_s25 }
 0x800   :  { %v341_v44 = vmin.f32 %v327_v34, %v337_v43  ;;  %v343_v45 = vmax.f32 %v327_v34, %v337_v43 }
 0x802   :  { %v345_v46 = vsel %vm340_vm11, %v341_v44, %v343_v45  ;;  %vm412_vm11 = vmxor %vm411_vm9, %vm646_vm3 }
 0x803   :  { %351 = vrot.lane.b32.xlu1 %v345_v46, %s643_s17  ;;  %347 = vrot.lane.b32.xlu0 %v345_v46, %s651_s25  ;;  %vm515_vm9 = vmxor %vm693_vm1, %vm646_vm3 }
 0x871   :  { %v350_v48 = vpop.permute.xlu0 %349  ;;  %v354_v49 = vpop.permute.xlu1 %353 }
 0x872   :  { %v356_v50 = vsel %vm742_vm10, %v350_v48, %v354_v49 }
 0x873   :  { %v360_v51 = vmin.f32 %v346_v42, %v356_v50  ;;  %v362_v52 = vmax.f32 %v346_v42, %v356_v50 }
 0x875   :  { %v348_v53 = vpop.permute.xlu0 %347  ;;  %v352_v54 = vpop.permute.xlu1 %351  ;;  %v364_v55 = vsel %vm358_vm13, %v360_v51, %v362_v52 }
 0x876   :  { %v355_v56 = vsel %vm742_vm10, %v348_v53, %v352_v54  ;;  %371 = vrot.lane.b32.xlu1 %v364_v55, %s649_s23  ;;  %367 = vrot.lane.b32.xlu0 %v364_v55, %s650_s24 }
 0x877   :  { %v359_v57 = vmin.f32 %v345_v46, %v355_v56  ;;  %v361_v58 = vmax.f32 %v345_v46, %v355_v56 }
 0x879   :  { %v363_v59 = vsel %vm358_vm13, %v359_v57, %v361_v58  ;;  %vm426_vm13 = vmxor %vm425_vm12, %vm646_vm3  ;;  %vm546_vm12 = vcmp.lt.s32.totalorder %v685_v3, 16 }
 0x87a   :  { %369 = vrot.lane.b32.xlu1 %v363_v59, %s649_s23  ;;  %365 = vrot.lane.b32.xlu0 %v363_v59, %s650_s24 }
 0x8e8   :  { %v368_v60 = vpop.permute.xlu0 %367  ;;  %v372_v61 = vpop.permute.xlu1 %371 }
 0x8e9   :  { %v374_v62 = vsel %vm711_vm5, %v368_v60, %v372_v61 }
 0x8ea   :  { %v378_v63 = vmin.f32 %v364_v55, %v374_v62  ;;  %v380_v0 = vmax.f32 %v364_v55, %v374_v62 }
 0x8ec   :  { %v366_v1 = vpop.permute.xlu0 %365  ;;  %v370_v2 = vpop.permute.xlu1 %369  ;;  %v382_v4 = vsel %vm376_vm2, %v378_v63, %v380_v0 }
 0x8ed   :  { %v373_v5 = vsel %vm711_vm5, %v366_v1, %v370_v2  ;;  %389 = vrot.lane.b32.xlu1 %v382_v4, %s648_s22  ;;  %385 = vrot.lane.b32.xlu0 %v382_v4, %s647_s0 }
 0x8ee   :  { %v377_v8 = vmin.f32 %v363_v59, %v373_v5  ;;  %v379_v9 = vmax.f32 %v363_v59, %v373_v5 }
 0x8f0   :  { %v381_v10 = vsel %vm376_vm2, %v377_v8, %v379_v9  ;;  %vm461_vm2 = vmxor %vm786_vm4, %vm646_vm3 }
 0x8f1   :  { %387 = vrot.lane.b32.xlu1 %v381_v10, %s648_s22  ;;  %383 = vrot.lane.b32.xlu0 %v381_v10, %s647_s0 }
 0x95f   :  { %v386_v11 = vpop.permute.xlu0 %385  ;;  %v390_v12 = vpop.permute.xlu1 %389 }
 0x960   :  { %v392_v13 = vsel %vm693_vm1, %v386_v11, %v390_v12 }
 0x961   :  { %v396_v14 = vmin.f32 %v382_v4, %v392_v13  ;;  %v398_v16 = vmax.f32 %v382_v4, %v392_v13 }
 0x963   :  { %v384_v17 = vpop.permute.xlu0 %383  ;;  %v388_v18 = vpop.permute.xlu1 %387  ;;  %v400_v19 = vsel %vm394_vm8, %v396_v14, %v398_v16 }
 0x964   :  { %v391_v22 = vsel %vm693_vm1, %v384_v17, %v388_v18  ;;  %407 = vrot.lane.b32.xlu1 %v400_v19, %s645_s21  ;;  %403 = vrot.lane.b32.xlu0 %v400_v19, %s644_s20 }
 0x965   :  { %v395_v23 = vmin.f32 %v381_v10, %v391_v22  ;;  %v397_v24 = vmax.f32 %v381_v10, %v391_v22 }
 0x967   :  { %v399_v26 = vsel %vm394_vm8, %v395_v23, %v397_v24  ;;  %vm497_vm8 = vmxor %vm711_vm5, %vm646_vm3 }
 0x968   :  { %405 = vrot.lane.b32.xlu1 %v399_v26, %s645_s21  ;;  %401 = vrot.lane.b32.xlu0 %v399_v26, %s644_s20 }
 0x9d6   :  { %v404_v27 = vpop.permute.xlu0 %403  ;;  %v408_v28 = vpop.permute.xlu1 %407 }
 0x9d7   :  { %v410_v29 = vsel %vm689_vm0, %v404_v27, %v408_v28 }
 0x9d8   :  { %v414_v30 = vmin.f32 %v400_v19, %v410_v29  ;;  %v416_v31 = vmax.f32 %v400_v19, %v410_v29 }
 0x9da   :  { %v402_v32 = vpop.permute.xlu0 %401  ;;  %v406_v33 = vpop.permute.xlu1 %405  ;;  %v418_v34 = vsel %vm412_vm11, %v414_v30, %v416_v31 }
 0x9db   :  { %v409_v35 = vsel %vm689_vm0, %v402_v32, %v406_v33  ;;  %421 = vrot.lane.b32.xlu0 %v418_v34, %s656_s30 }
 0x9dc   :  { %v413_v36 = vmin.f32 %v399_v26, %v409_v35  ;;  %v415_v37 = vmax.f32 %v399_v26, %v409_v35 }
 0x9de   :  { %v417_v38 = vsel %vm412_vm11, %v413_v36, %v415_v37  ;;  %vm533_vm11 = vmxor %vm689_vm0, %vm646_vm3 }
 0x9df   :  { %419 = vrot.lane.b32.xlu1 %v417_v38, %s656_s30 }
 0xa4d   :  { %v422_v39 = vpop.permute.xlu0 %421 }
 0xa4e   :  { %v428_v40 = vmin.f32 %v418_v34, %v422_v39  ;;  %v430_v41 = vmax.f32 %v418_v34, %v422_v39 }
 0xa50   :  { %v432_v42 = vsel %vm426_vm13, %v428_v40, %v430_v41 }
 0xa51   :  { %435 = vrot.lane.b32.xlu0 %v432_v42, %s655_s29  ;;  %439 = vrot.lane.b32.xlu1 %v432_v42, %s654_s28  ;;  %v420_v43 = vpop.permute.xlu1 %419 }
 0xa52   :  { %v427_v44 = vmin.f32 %v417_v38, %v420_v43  ;;  %v429_v45 = vmax.f32 %v417_v38, %v420_v43 }
 0xa54   :  { %v431_v46 = vsel %vm426_vm13, %v427_v44, %v429_v45 }
 0xa55   :  { %437 = vrot.lane.b32.xlu1 %v431_v46, %s654_s28  ;;  %433 = vrot.lane.b32.xlu0 %v431_v46, %s655_s29 }
 0xac3   :  { %v436_v20 = vpop.permute.xlu0 %435  ;;  %v440_v48 = vpop.permute.xlu1 %439 }
 0xac4   :  { %v442_v49 = vsel %vm843_vm15, %v436_v20, %v440_v48 }
 0xac5   :  { %v446_v50 = vmin.f32 %v432_v42, %v442_v49  ;;  %v448_v51 = vmax.f32 %v432_v42, %v442_v49 }
 0xac7   :  { %v434_v52 = vpop.permute.xlu0 %433  ;;  %v438_v53 = vpop.permute.xlu1 %437  ;;  %v450_v54 = vsel %vm444_vm14, %v446_v50, %v448_v51 }
 0xac8   :  { %v441_v55 = vsel %vm843_vm15, %v434_v52, %v438_v53  ;;  %457 = vrot.lane.b32.xlu1 %v450_v54, %s652_s26  ;;  %453 = vrot.lane.b32.xlu0 %v450_v54, %s653_s27  ;;  %vm462_vm15 = vmxor %vm461_vm2, %vm646_vm3 }
 0xac9   :  { %v445_v56 = vmin.f32 %v431_v46, %v441_v55  ;;  %v447_v57 = vmax.f32 %v431_v46, %v441_v55 }
 0xacb   :  { %v449_v58 = vsel %vm444_vm14, %v445_v56, %v447_v57 }
 0xacc   :  { %455 = vrot.lane.b32.xlu1 %v449_v58, %s652_s26  ;;  %451 = vrot.lane.b32.xlu0 %v449_v58, %s653_s27 }
 0xb3a   :  { %v454_v59 = vpop.permute.xlu0 %453  ;;  %v458_v60 = vpop.permute.xlu1 %457 }
 0xb3b   :  { %v460_v15 = vsel %vm786_vm4, %v454_v59, %v458_v60 }
 0xb3c   :  { %v464_v61 = vmin.f32 %v450_v54, %v460_v15  ;;  %v466_v62 = vmax.f32 %v450_v54, %v460_v15 }
 0xb3e   :  { %v452_v63 = vpop.permute.xlu0 %451  ;;  %v456_v0 = vpop.permute.xlu1 %455  ;;  %v468_v1 = vsel %vm462_vm15, %v464_v61, %v466_v62 }
 0xb3f   :  { %v459_v2 = vsel %vm786_vm4, %v452_v63, %v456_v0  ;;  %475 = vrot.lane.b32.xlu1 %v468_v1, %s643_s17  ;;  %471 = vrot.lane.b32.xlu0 %v468_v1, %s651_s25  ;;  %vm480_vm4 = vmxor %vm479_vm7, %vm646_vm3 }
 0xb40   :  { %v463_v4 = vmin.f32 %v449_v58, %v459_v2  ;;  %v465_v5 = vmax.f32 %v449_v58, %v459_v2 }
 0xb42   :  { %v467_v8 = vsel %vm462_vm15, %v463_v4, %v465_v5 }
 0xb43   :  { %473 = vrot.lane.b32.xlu1 %v467_v8, %s643_s17  ;;  %469 = vrot.lane.b32.xlu0 %v467_v8, %s651_s25 }
 0xbb1   :  { %v472_v9 = vpop.permute.xlu0 %471  ;;  %v476_v10 = vpop.permute.xlu1 %475 }
 0xbb2   :  { %v478_v25 = vsel %vm742_vm10, %v472_v9, %v476_v10 }
 0xbb3   :  { %v482_v11 = vmin.f32 %v468_v1, %v478_v25  ;;  %v484_v12 = vmax.f32 %v468_v1, %v478_v25 }
 0xbb5   :  { %v470_v13 = vpop.permute.xlu0 %469  ;;  %v474_v14 = vpop.permute.xlu1 %473  ;;  %v486_v16 = vsel %vm480_vm4, %v482_v11, %v484_v12 }
 0xbb6   :  { %v477_v17 = vsel %vm742_vm10, %v470_v13, %v474_v14  ;;  %493 = vrot.lane.b32.xlu1 %v486_v16, %s649_s23  ;;  %489 = vrot.lane.b32.xlu0 %v486_v16, %s650_s24  ;;  %vm498_vm10 = vmxor %vm497_vm8, %vm646_vm3 }
 0xbb7   :  { %v481_v18 = vmin.f32 %v467_v8, %v477_v17  ;;  %v483_v19 = vmax.f32 %v467_v8, %v477_v17 }
 0xbb9   :  { %v485_v22 = vsel %vm480_vm4, %v481_v18, %v483_v19 }
 0xbba   :  { %491 = vrot.lane.b32.xlu1 %v485_v22, %s649_s23  ;;  %487 = vrot.lane.b32.xlu0 %v485_v22, %s650_s24 }
 0xc28   :  { %v490_v23 = vpop.permute.xlu0 %489  ;;  %v494_v24 = vpop.permute.xlu1 %493 }
 0xc29   :  { %v496_v47 = vsel %vm711_vm5, %v490_v23, %v494_v24 }
 0xc2a   :  { %v500_v26 = vmin.f32 %v486_v16, %v496_v47  ;;  %v502_v27 = vmax.f32 %v486_v16, %v496_v47 }
 0xc2c   :  { %v488_v28 = vpop.permute.xlu0 %487  ;;  %v492_v29 = vpop.permute.xlu1 %491  ;;  %v504_v30 = vsel %vm498_vm10, %v500_v26, %v502_v27 }
 0xc2d   :  { %v495_v31 = vsel %vm711_vm5, %v488_v28, %v492_v29  ;;  %511 = vrot.lane.b32.xlu1 %v504_v30, %s648_s22  ;;  %507 = vrot.lane.b32.xlu0 %v504_v30, %s647_s0  ;;  %vm516_vm5 = vmxor %vm515_vm9, %vm646_vm3 }
 0xc2e   :  { %v499_v32 = vmin.f32 %v485_v22, %v495_v31  ;;  %v501_v33 = vmax.f32 %v485_v22, %v495_v31 }
 0xc30   :  { %v503_v34 = vsel %vm498_vm10, %v499_v32, %v501_v33 }
 0xc31   :  { %509 = vrot.lane.b32.xlu1 %v503_v34, %s648_s22  ;;  %505 = vrot.lane.b32.xlu0 %v503_v34, %s647_s0 }
 0xc9f   :  { %v508_v35 = vpop.permute.xlu0 %507  ;;  %v512_v36 = vpop.permute.xlu1 %511 }
 0xca0   :  { %v514_v21 = vsel %vm693_vm1, %v508_v35, %v512_v36 }
 0xca1   :  { %v518_v37 = vmin.f32 %v504_v30, %v514_v21  ;;  %v520_v38 = vmax.f32 %v504_v30, %v514_v21 }
 0xca3   :  { %v506_v39 = vpop.permute.xlu0 %505  ;;  %v510_v40 = vpop.permute.xlu1 %509  ;;  %v522_v41 = vsel %vm516_vm5, %v518_v37, %v520_v38 }
 0xca4   :  { %v513_v42 = vsel %vm693_vm1, %v506_v39, %v510_v40  ;;  %529 = vrot.lane.b32.xlu1 %v522_v41, %s645_s21  ;;  %525 = vrot.lane.b32.xlu0 %v522_v41, %s644_s20  ;;  %vm534_vm1 = vmxor %vm533_vm11, %vm646_vm3 }
 0xca5   :  { %v517_v43 = vmin.f32 %v503_v34, %v513_v42  ;;  %v519_v44 = vmax.f32 %v503_v34, %v513_v42 }
 0xca7   :  { %v521_v45 = vsel %vm516_vm5, %v517_v43, %v519_v44 }
 0xca8   :  { %527 = vrot.lane.b32.xlu1 %v521_v45, %s645_s21  ;;  %523 = vrot.lane.b32.xlu0 %v521_v45, %s644_s20 }
 0xd16   :  { %v526_v46 = vpop.permute.xlu0 %525  ;;  %v530_v20 = vpop.permute.xlu1 %529 }
 0xd17   :  { %v532_v7 = vsel %vm689_vm0, %v526_v46, %v530_v20 }
 0xd18   :  { %v536_v48 = vmin.f32 %v522_v41, %v532_v7  ;;  %v538_v49 = vmax.f32 %v522_v41, %v532_v7 }
 0xd1a   :  { %v524_v50 = vpop.permute.xlu0 %523  ;;  %v528_v51 = vpop.permute.xlu1 %527  ;;  %v540_v52 = vsel %vm534_vm1, %v536_v48, %v538_v49 }
 0xd1b   :  { %v531_v53 = vsel %vm689_vm0, %v524_v50, %v528_v51  ;;  %v543_v54 = vand.u32 2147483647, %v540_v52  ;;  %vm557_vm0 = vcmask 0  }
 0xd1c   :  { %v535_v55 = vmin.f32 %v521_v45, %v531_v53  ;;  %v537_v56 = vmax.f32 %v521_v45, %v531_v53 }
 0xd1d   :  { %591 = vrcp.f32 %v543_v54 }
 0xd1e   :  { %v539_v57 = vsel %vm534_vm1, %v535_v55, %v537_v56 }
 0xd1f   :  { %v541_v58 = vsub.f32 %v539_v57, %v540_v52 }
 0xd21   :  { %v542_v59 = vand.u32 2147483647, %v541_v58 }
 0xd27   :  { %v592_v60 = vpop.eup %591 }
 0xd28   :  { %v545_v15 = vmul.f32 %v592_v60, %v542_v59 }
 0xd2a   :  { %v547_v61 = vsel %vm546_vm12, %v545_v15, 0.0 }
 0xd2b   :  { %548 = vadd.xlane.f32.xlu0 %v547_v61 }
 0xdb8   :  { %v549_v62 = vpop.xlane.xlu0 %548 }
 0xdb9   :  { %v550_v63 = vrot.slane %v549_v62, 4 }
 0xdbb   :  { %v551_v0 = vadd.f32 %v550_v63, %v549_v62 }
 0xdbd   :  { %v552_v1 = vrot.slane %v551_v0, 2 }
 0xdbf   :  { %v553_v2 = vadd.f32 %v552_v1, %v551_v0 }
 0xdc1   :  { %v554_v6 = vrot.slane %v553_v2, 1 }
 0xdc3   :  { %v555_v4 = vadd.f32 %v554_v6, %v553_v2 }
 0xdc5   :  { %v556_v5 = vmul.f32 0.0078125, %v555_v4 }
 0xdc7   :  { %558 = vst.msk [vmem:[#allocation5] sm:$0x1] %vm557_vm0, %v556_v5 }
 0xdc8   :  { %626 = shalt.err (!%p623_p12)
}
 0xdc9   :  { %s627_s8 = scalar_lea.hbm %s1081_s1, 16 }
 0xdca   :  { %p628_p13 = scmp.ne.s32.totalorder %s1081_s1, %s627_s8  ;;  %p631_p0 = scmp.lt.u32.totalorder %s627_s8, %s1081_s1 }
 0xdcc   :  { %p633_p1 = pnand %p631_p0, %p628_p13 }
 0xdce   :  { %636 = shalt.err (!%p633_p1)
}
 0xdcf   :  { %568 = dma.vmem_to_hbm [thread:$0]  %s566_s3, 16, %s1081_s1, [#allocation4]  }
 0xdd0   :  { %639 = dma.done.wait [#allocation4], 16  }
 0xdd1   :  { %640 = vsyncadd [#allocation4], 4294967280 }
 0xdd2   :  { %572 = vsyncpa [#allocation3], 1 }
 0xdd3   :  { %573 = vsyncpa [#allocation4], 1 }

</bundles_post_ra>
